<compile_context>
chip_gen: v7x
topology: tpu7x:2x2x1
jax: 0.10.0
libtpu: 0.0.40
codegen_flags: <defaults>
</compile_context>

<pallas_src>
import numpy as np

import jax
import jax.numpy as jnp
from jax.experimental import pallas as pl
from jax.experimental.pallas import tpu as pltpu


# -----------------------------------------------------------------------------
# Kernel
# -----------------------------------------------------------------------------
def actor_critic_kernel(
    x_ref, gum_ref, hx_ref,
    wc1_ref, bc1_ref, wc2_ref, bc2_ref, wc3_ref, bc3_ref, wc4_ref, bc4_ref,
    wg_ref, bg_ref, whead_ref, bhead_ref,
    hx_out_ref, pack_out_ref,
):
    def elu(t):
        # F.elu(alpha=1).  expm1-accurate via a cubic Taylor branch near zero, using
        # only guaranteed-supported ops; all in f32.
        tn = jnp.minimum(t, 0.0)
        taylor = tn * (1.0 + tn * (0.5 + tn * (1.0 / 6.0)))
        em1 = jnp.where(tn > -0.01, taylor, jnp.exp(tn) - 1.0)
        return jnp.where(t > 0.0, t, em1)

    def conv_layer(h, w_ref_, b_ref_):
        # h: (B, Lin*Cin) flat slab; w: folded im2col weight (Lin*Cin, Lo*Cout) in bf16.
        # One bf16 MXU matmul == Conv1d(k=3, s=2, p=1); padded boundary taps are zeros.
        y = jnp.dot(h.astype(jnp.bfloat16), w_ref_[...],
                    preferred_element_type=jnp.float32) + b_ref_[...]
        return elu(y)

    # ---- conv stack: 4 bf16 matmuls, activations stay 2D and lane-dense ------
    h = x_ref[...]                                  # (B, Cin*L)  NCW-flattened input
    h = conv_layer(h, wc1_ref, bc1_ref)             # (B, L1*32)
    h = conv_layer(h, wc2_ref, bc2_ref)             # (B, L2*32)
    h = conv_layer(h, wc3_ref, bc3_ref)             # (B, L3*32)
    conv_state = conv_layer(h, wc4_ref, bc4_ref)    # (B, 32)    (final length == 1)

    # ---- GRUCell: ONE fused matmul (bf16 operands, f32 accumulate + gate math) ----
    hx = hx_ref[...]                                # (B, H) f32
    B, H = hx.shape
    cs = conv_state.astype(jnp.bfloat16)            # (B, 32)
    pad = jnp.zeros((B, 128 - cs.shape[1]), jnp.bfloat16)
    # concat boundary for hx sits at lane 128 -> no cross-lane shuffle of hx.
    xin = jnp.concatenate([cs, pad, hx.astype(jnp.bfloat16)], axis=1)   # (B, 128+H)
    g = jnp.dot(xin, wg_ref[...], preferred_element_type=jnp.float32) + bg_ref[...]
    # g columns: [ gi_rz+gh_rz (2H) | gi_n (H) | gh_n (H) ]
    rz = jax.nn.sigmoid(g[:, :2 * H])
    r, z = rz[:, :H], rz[:, H:]
    n = jnp.tanh(g[:, 2 * H:3 * H] + r * g[:, 3 * H:])
    hx_new = (1.0 - z) * n + z * hx
    hx_out_ref[...] = hx_new                        # aliases the hx input buffer

    # ---- fused pi/v head (one matmul) ----------------------------------------
    head = jnp.dot(hx_new.astype(jnp.bfloat16), whead_ref[...],
                   preferred_element_type=jnp.float32) + bhead_ref[...]   # (B, A+1)
    A = head.shape[1] - 1
    logits = head[:, :A]
    v = head[:, A:A + 1]

    # ---- log-softmax (== Categorical(softmax(pi)).log_prob support) ----------
    m = jnp.max(logits, axis=1, keepdims=True)
    lse = jnp.log(jnp.sum(jnp.exp(logits - m), axis=1, keepdims=True)) + m
    logp = logits - lse                             # (B, A)

    # ---- categorical sample: Gumbel-max with wrapper-provided Gumbel noise ---
    g_noise = gum_ref[...][:, :A]                   # slice (B, A) from lane-dense slab
    scores = logp + g_noise
    colA = jax.lax.broadcasted_iota(jnp.int32, scores.shape, 1)
    smax = jnp.max(scores, axis=1, keepdims=True)
    cand = jnp.where(scores >= smax, colA.astype(jnp.float32), 1e9)
    action_f = jnp.min(cand, axis=1, keepdims=True)            # (B, 1) f32, value in [0,A)
    action_i = action_f.astype(jnp.int32)
    logp_a = jnp.sum(jnp.where(colA == action_i, logp, 0.0),
                     axis=1, keepdims=True)                     # log_prob(action)

    # ---- single lane-dense packed output: [v | log_prob | action | 0 ...] ----
    col = jax.lax.broadcasted_iota(jnp.int32, pack_out_ref.shape, 1)
    pack_out_ref[...] = jnp.where(col == 0, v,
                          jnp.where(col == 1, logp_a,
                            jnp.where(col == 2, action_f, 0.0)))


# -----------------------------------------------------------------------------
# pallas_call wrapper
# -----------------------------------------------------------------------------
_PARAM_ORDER = ("wc1", "bc1", "wc2", "bc2", "wc3", "bc3", "wc4", "bc4",
                "wg", "bg", "whead", "bhead")


def _actor_critic_pallas(x_flat, gumbel, hx, params):
    B = x_flat.shape[0]
    H = hx.shape[1]
    vmem = pl.BlockSpec(memory_space=pltpu.MemorySpace.VMEM)
    args = (x_flat, gumbel, hx) + tuple(params[k] for k in _PARAM_ORDER)
    return pl.pallas_call(
        actor_critic_kernel,
        out_shape=(
            jax.ShapeDtypeStruct((B, H), jnp.float32),     # hx_new (in-place over hx)
            jax.ShapeDtypeStruct((B, 128), jnp.float32),   # packed [v, log_prob, action]
        ),
        in_specs=[vmem] * len(args),
        out_specs=(vmem, vmem),
        input_output_aliases={2: 0},                       # hx buffer reused for hx_new
    )(*args)


@jax.jit
def _forward_jit(state_ncw, hx, key, params):
    B, C, L = state_ncw.shape
    # No transpose: the layer-1 folded weight consumes the NCW-flattened input directly.
    x_flat = state_ncw.reshape(B, C * L).astype(jnp.float32)
    gumbel = jax.random.gumbel(key, (B, 128), dtype=jnp.float32)
    hx_new, packed = _actor_critic_pallas(x_flat, gumbel, hx.astype(jnp.float32), params)
    v = packed[:, 0:1]
    log_prob = packed[:, 1]
    action = packed[:, 2].astype(jnp.int32)
    return action, v, log_prob, hx_new


def actor_critic_forward(state_ncw, hx, params, key):
    """Device-array version of the PyTorch forward: returns (action[B], v[B,1],
    log_prob[B], hx_new[B,H]).  No per-step host sync — convert action to Python int
    only when the host actually needs it (e.g. once per env.step batch)."""
    return _forward_jit(state_ncw, hx, key, params)


# -----------------------------------------------------------------------------
# Parameter init (PyTorch layouts) + folding into the kernel layout
# -----------------------------------------------------------------------------
def _conv_out_len(lin):
    return (lin + 2 - 3) // 2 + 1          # kernel=3, stride=2, padding=1


def _fold_conv1d_s2(w, lin, channels_first_input):
    """Fold a Conv1d(k=3,s=2,p=1) weight (Cout, Cin, 3) into a dense matrix Wf so that
    x_flat @ Wf == conv(x) flattened channels-last.  Boundary (padded) taps are zeros."""
    w = np.asarray(w, np.float32)
    cout, cin, K = w.shape
    lo = _conv_out_len(lin)
    wf = np.zeros((lin * cin, lo * cout), np.float32)
    for j in range(lo):
        for k in range(K):
            l = 2 * j + k - 1
            if 0 <= l < lin:
                for c in range(cin):
                    row = c * lin + l if channels_first_input else l * cin + c
                    wf[row, j * cout:(j + 1) * cout] = w[:, c, k]
    return wf


def init_torch_params(key, input_dims, n_actions=3, hidden=256):
    """Deterministic params in the original PyTorch layouts/shapes."""
    ks = jax.random.split(key, 16)

    def u(k, shape, fan_in):
        bound = 1.0 / float(fan_in) ** 0.5
        return jax.random.uniform(k, shape, jnp.float32, -bound, bound)

    tp = {}
    cins = [input_dims, 32, 32, 32]
    idx = 0
    for i in range(4):
        fan = cins[i] * 3
        tp[f"conv{i + 1}_w"] = u(ks[idx], (32, cins[i], 3), fan); idx += 1
        tp[f"conv{i + 1}_b"] = u(ks[idx], (32,), fan); idx += 1
    conv_shape = 32   # calc_conv_output: length-1 probe through 4 stride-2 convs -> 32
    tp["gru_wih"] = u(ks[idx], (3 * hidden, conv_shape), hidden); idx += 1
    tp["gru_whh"] = u(ks[idx], (3 * hidden, hidden), hidden); idx += 1
    tp["gru_bih"] = u(ks[idx], (3 * hidden,), hidden); idx += 1
    tp["gru_bhh"] = u(ks[idx], (3 * hidden,), hidden); idx += 1
    tp["pi_w"] = u(ks[idx], (n_actions, hidden), hidden); idx += 1
    tp["pi_b"] = u(ks[idx], (n_actions,), hidden); idx += 1
    tp["v_w"] = u(ks[idx], (1, hidden), hidden); idx += 1
    tp["v_b"] = u(ks[idx], (1,), hidden); idx += 1
    return tp


def prepare_params(tp, input_dims, L, hidden=256):
    """Fold / transpose / cast PyTorch-layout params into the kernel layout."""
    p = {}
    lin = L
    for i in range(4):
        lo = _conv_out_len(lin)
        wf = _fold_conv1d_s2(tp[f"conv{i + 1}_w"], lin, channels_first_input=(i == 0))
        # bf16 matmul weights (f32 accumulation in-kernel); ~1e-3 relative rounding.
        p[f"wc{i + 1}"] = jnp.asarray(wf, jnp.bfloat16)
        p[f"bc{i + 1}"] = jnp.asarray(
            np.tile(np.asarray(tp[f"conv{i + 1}_b"], np.float32), lo)[None, :])
        lin = lo
    assert lin == 1, f"final conv length must be 1, got {lin} (input length L={L})"
    conv_shape = 32 * lin
    H = hidden
    assert tp["gru_wih"].shape == (3 * H, conv_shape)

    # Fused GRU weight: rows = [conv (32) | zero pad to 128 | hx (H)],
    # cols = [ r,z combined (2H) | gi_n (H) | gh_n (H) ].  bf16, f32 accumulate.
    wih_t = np.asarray(tp["gru_wih"], np.float32).T    # (32, 3H)
    whh_t = np.asarray(tp["gru_whh"], np.float32).T    # (H, 3H)
    wg = np.zeros((128 + H, 4 * H), np.float32)
    wg[0:conv_shape, 0:2 * H] = wih_t[:, 0:2 * H]
    wg[0:conv_shape, 2 * H:3 * H] = wih_t[:, 2 * H:3 * H]
    wg[128:128 + H, 0:2 * H] = whh_t[:, 0:2 * H]
    wg[128:128 + H, 3 * H:4 * H] = whh_t[:, 2 * H:3 * H]
    bih = np.asarray(tp["gru_bih"], np.float32)
    bhh = np.asarray(tp["gru_bhh"], np.float32)
    bg = np.concatenate([bih[0:2 * H] + bhh[0:2 * H],
                         bih[2 * H:3 * H], bhh[2 * H:3 * H]])[None, :]   # (1, 4H)
    p["wg"] = jnp.asarray(wg, jnp.bfloat16)
    p["bg"] = jnp.asarray(bg, jnp.float32)

    # Fused pi/v head: (H, A+1) bf16 weight, f32 bias.
    whead = np.concatenate([np.asarray(tp["pi_w"], np.float32).T,
                            np.asarray(tp["v_w"], np.float32).T], axis=1)
    bhead = np.concatenate([np.asarray(tp["pi_b"], np.float32),
                            np.asarray(tp["v_b"], np.float32)])[None, :]
    p["whead"] = jnp.asarray(whead, jnp.bfloat16)
    p["bhead"] = jnp.asarray(bhead, jnp.float32)
    return p


# TODO(synk): calc_R / calc_cost are host-side Python training-loop helpers (returns /
# GAE / losses over a rollout), not part of the forward hot path; not implemented as kernels.

if __name__ == "__main__":
    key = jax.random.PRNGKey(0)
    k_param, k_state, k_hx, k_samp = jax.random.split(key, 4)

    B, C_IN, L, HIDDEN, N_ACT = 2, 4, 16, 256, 3
    torch_params = init_torch_params(k_param, input_dims=C_IN, n_actions=N_ACT, hidden=HIDDEN)
    params = prepare_params(torch_params, input_dims=C_IN, L=L, hidden=HIDDEN)

    state = jax.random.normal(k_state, (B, C_IN, L), dtype=jnp.float32)   # NCW like PyTorch
    hx = jax.random.normal(k_hx, (B, HIDDEN), dtype=jnp.float32) * 0.1

    action, v, log_prob, hx_new = actor_critic_forward(state, hx, params, k_samp)
    jax.block_until_ready((action, v, log_prob, hx_new))

    assert action.shape == (B,) and v.shape == (B, 1)
    assert log_prob.shape == (B,) and hx_new.shape == (B, HIDDEN)
    assert bool(jnp.all((action >= 0) & (action < N_ACT)))
    assert bool(jnp.all(log_prob <= 0.0)) and bool(jnp.all(jnp.isfinite(hx_new)))
    _ = int(action[0])   # single host conversion, after block_until_ready (demo only)
    print("KERNEL_OK")
</pallas_src>

<mosaic_0001>
module attributes {stable_mosaic.version = 11 : i64} {
  func.func @actor_critic_kernel(%arg0: memref<2x64xf32, #tpu.memory_space<vmem>>, %arg1: memref<2x128xf32, #tpu.memory_space<vmem>>, %arg2: memref<2x256xf32, #tpu.memory_space<vmem>>, %arg3: memref<64x256xbf16, #tpu.memory_space<vmem>>, %arg4: memref<1x256xf32, #tpu.memory_space<vmem>>, %arg5: memref<256x128xbf16, #tpu.memory_space<vmem>>, %arg6: memref<1x128xf32, #tpu.memory_space<vmem>>, %arg7: memref<128x64xbf16, #tpu.memory_space<vmem>>, %arg8: memref<1x64xf32, #tpu.memory_space<vmem>>, %arg9: memref<64x32xbf16, #tpu.memory_space<vmem>>, %arg10: memref<1x32xf32, #tpu.memory_space<vmem>>, %arg11: memref<384x1024xbf16, #tpu.memory_space<vmem>>, %arg12: memref<1x1024xf32, #tpu.memory_space<vmem>>, %arg13: memref<256x4xbf16, #tpu.memory_space<vmem>>, %arg14: memref<1x4xf32, #tpu.memory_space<vmem>>, %arg15: memref<2x256xf32, #tpu.memory_space<vmem>>, %arg16: memref<2x128xf32, #tpu.memory_space<vmem>>) attributes {dimension_semantics = [], scalar_prefetch = 0 : i64, scratch_operands = 0 : i64, tpu.core_type = #tpu.core_type<tc>} {
    %c0 = arith.constant 0 : index
    %c0_0 = arith.constant 0 : index
    %0 = vector.load %arg0[%c0, %c0_0] : memref<2x64xf32, #tpu.memory_space<vmem>>, vector<2x64xf32>
    %1 = arith.truncf %0 : vector<2x64xf32> to vector<2x64xbf16>
    %c0_1 = arith.constant 0 : index
    %c0_2 = arith.constant 0 : index
    %2 = vector.load %arg3[%c0_1, %c0_2] : memref<64x256xbf16, #tpu.memory_space<vmem>>, vector<64x256xbf16>
    %cst = arith.constant dense<0.000000e+00> : vector<2x256xf32>
    %3 = tpu.matmul %1, %2, %cst {dimension_numbers = #tpu.dot_dimension_numbers<[1], [0], [0], [1], [0, 0, 1, 1], [], []>} : vector<2x64xbf16>, vector<64x256xbf16>, vector<2x256xf32> -> vector<2x256xf32>
    %c0_3 = arith.constant 0 : index
    %c0_4 = arith.constant 0 : index
    %4 = vector.load %arg4[%c0_3, %c0_4] : memref<1x256xf32, #tpu.memory_space<vmem>>, vector<1x256xf32>
    %5 = vector.broadcast %4 : vector<1x256xf32> to vector<2x256xf32>
    %6 = arith.addf %3, %5 : vector<2x256xf32>
    %cst_5 = arith.constant 0.000000e+00 : f32
    %7 = vector.broadcast %cst_5 : f32 to vector<2x256xf32>
    %8 = arith.minimumf %6, %7 : vector<2x256xf32>
    %cst_6 = arith.constant 0.166666672 : f32
    %9 = vector.broadcast %cst_6 : f32 to vector<2x256xf32>
    %10 = arith.mulf %8, %9 : vector<2x256xf32>
    %cst_7 = arith.constant 5.000000e-01 : f32
    %11 = vector.broadcast %cst_7 : f32 to vector<2x256xf32>
    %12 = arith.addf %11, %10 : vector<2x256xf32>
    %13 = arith.mulf %8, %12 : vector<2x256xf32>
    %cst_8 = arith.constant 1.000000e+00 : f32
    %14 = vector.broadcast %cst_8 : f32 to vector<2x256xf32>
    %15 = arith.addf %14, %13 : vector<2x256xf32>
    %16 = arith.mulf %8, %15 : vector<2x256xf32>
    %cst_9 = arith.constant -0.00999999977 : f32
    %17 = vector.broadcast %cst_9 : f32 to vector<2x256xf32>
    %18 = arith.cmpf ogt, %8, %17 : vector<2x256xf32>
    %19 = math.exp %8 : vector<2x256xf32>
    %cst_10 = arith.constant 1.000000e+00 : f32
    %20 = vector.broadcast %cst_10 : f32 to vector<2x256xf32>
    %21 = arith.subf %19, %20 : vector<2x256xf32>
    %22 = arith.select %18, %16, %21 : vector<2x256xi1>, vector<2x256xf32>
    %cst_11 = arith.constant 0.000000e+00 : f32
    %23 = vector.broadcast %cst_11 : f32 to vector<2x256xf32>
    %24 = arith.cmpf ogt, %6, %23 : vector<2x256xf32>
    %25 = arith.select %24, %6, %22 : vector<2x256xi1>, vector<2x256xf32>
    %26 = arith.truncf %25 : vector<2x256xf32> to vector<2x256xbf16>
    %c0_12 = arith.constant 0 : index
    %c0_13 = arith.constant 0 : index
    %27 = vector.load %arg5[%c0_12, %c0_13] : memref<256x128xbf16, #tpu.memory_space<vmem>>, vector<256x128xbf16>
    %cst_14 = arith.constant dense<0.000000e+00> : vector<2x128xf32>
    %28 = tpu.matmul %26, %27, %cst_14 {dimension_numbers = #tpu.dot_dimension_numbers<[1], [0], [0], [1], [0, 0, 1, 1], [], []>} : vector<2x256xbf16>, vector<256x128xbf16>, vector<2x128xf32> -> vector<2x128xf32>
    %c0_15 = arith.constant 0 : index
    %c0_16 = arith.constant 0 : index
    %29 = vector.load %arg6[%c0_15, %c0_16] : memref<1x128xf32, #tpu.memory_space<vmem>>, vector<1x128xf32>
    %30 = vector.broadcast %29 : vector<1x128xf32> to vector<2x128xf32>
    %31 = arith.addf %28, %30 : vector<2x128xf32>
    %cst_17 = arith.constant 0.000000e+00 : f32
    %32 = vector.broadcast %cst_17 : f32 to vector<2x128xf32>
    %33 = arith.minimumf %31, %32 : vector<2x128xf32>
    %cst_18 = arith.constant 0.166666672 : f32
    %34 = vector.broadcast %cst_18 : f32 to vector<2x128xf32>
    %35 = arith.mulf %33, %34 : vector<2x128xf32>
    %cst_19 = arith.constant 5.000000e-01 : f32
    %36 = vector.broadcast %cst_19 : f32 to vector<2x128xf32>
    %37 = arith.addf %36, %35 : vector<2x128xf32>
    %38 = arith.mulf %33, %37 : vector<2x128xf32>
    %cst_20 = arith.constant 1.000000e+00 : f32
    %39 = vector.broadcast %cst_20 : f32 to vector<2x128xf32>
    %40 = arith.addf %39, %38 : vector<2x128xf32>
    %41 = arith.mulf %33, %40 : vector<2x128xf32>
    %cst_21 = arith.constant -0.00999999977 : f32
    %42 = vector.broadcast %cst_21 : f32 to vector<2x128xf32>
    %43 = arith.cmpf ogt, %33, %42 : vector<2x128xf32>
    %44 = math.exp %33 : vector<2x128xf32>
    %cst_22 = arith.constant 1.000000e+00 : f32
    %45 = vector.broadcast %cst_22 : f32 to vector<2x128xf32>
    %46 = arith.subf %44, %45 : vector<2x128xf32>
    %47 = arith.select %43, %41, %46 : vector<2x128xi1>, vector<2x128xf32>
    %cst_23 = arith.constant 0.000000e+00 : f32
    %48 = vector.broadcast %cst_23 : f32 to vector<2x128xf32>
    %49 = arith.cmpf ogt, %31, %48 : vector<2x128xf32>
    %50 = arith.select %49, %31, %47 : vector<2x128xi1>, vector<2x128xf32>
    %51 = arith.truncf %50 : vector<2x128xf32> to vector<2x128xbf16>
    %c0_24 = arith.constant 0 : index
    %c0_25 = arith.constant 0 : index
    %52 = vector.load %arg7[%c0_24, %c0_25] : memref<128x64xbf16, #tpu.memory_space<vmem>>, vector<128x64xbf16>
    %cst_26 = arith.constant dense<0.000000e+00> : vector<2x64xf32>
    %53 = tpu.matmul %51, %52, %cst_26 {dimension_numbers = #tpu.dot_dimension_numbers<[1], [0], [0], [1], [0, 0, 1, 1], [], []>} : vector<2x128xbf16>, vector<128x64xbf16>, vector<2x64xf32> -> vector<2x64xf32>
    %c0_27 = arith.constant 0 : index
    %c0_28 = arith.constant 0 : index
    %54 = vector.load %arg8[%c0_27, %c0_28] : memref<1x64xf32, #tpu.memory_space<vmem>>, vector<1x64xf32>
    %55 = vector.broadcast %54 : vector<1x64xf32> to vector<2x64xf32>
    %56 = arith.addf %53, %55 : vector<2x64xf32>
    %cst_29 = arith.constant 0.000000e+00 : f32
    %57 = vector.broadcast %cst_29 : f32 to vector<2x64xf32>
    %58 = arith.minimumf %56, %57 : vector<2x64xf32>
    %cst_30 = arith.constant 0.166666672 : f32
    %59 = vector.broadcast %cst_30 : f32 to vector<2x64xf32>
    %60 = arith.mulf %58, %59 : vector<2x64xf32>
    %cst_31 = arith.constant 5.000000e-01 : f32
    %61 = vector.broadcast %cst_31 : f32 to vector<2x64xf32>
    %62 = arith.addf %61, %60 : vector<2x64xf32>
    %63 = arith.mulf %58, %62 : vector<2x64xf32>
    %cst_32 = arith.constant 1.000000e+00 : f32
    %64 = vector.broadcast %cst_32 : f32 to vector<2x64xf32>
    %65 = arith.addf %64, %63 : vector<2x64xf32>
    %66 = arith.mulf %58, %65 : vector<2x64xf32>
    %cst_33 = arith.constant -0.00999999977 : f32
    %67 = vector.broadcast %cst_33 : f32 to vector<2x64xf32>
    %68 = arith.cmpf ogt, %58, %67 : vector<2x64xf32>
    %69 = math.exp %58 : vector<2x64xf32>
    %cst_34 = arith.constant 1.000000e+00 : f32
    %70 = vector.broadcast %cst_34 : f32 to vector<2x64xf32>
    %71 = arith.subf %69, %70 : vector<2x64xf32>
    %72 = arith.select %68, %66, %71 : vector<2x64xi1>, vector<2x64xf32>
    %cst_35 = arith.constant 0.000000e+00 : f32
    %73 = vector.broadcast %cst_35 : f32 to vector<2x64xf32>
    %74 = arith.cmpf ogt, %56, %73 : vector<2x64xf32>
    %75 = arith.select %74, %56, %72 : vector<2x64xi1>, vector<2x64xf32>
    %76 = arith.truncf %75 : vector<2x64xf32> to vector<2x64xbf16>
    %c0_36 = arith.constant 0 : index
    %c0_37 = arith.constant 0 : index
    %77 = vector.load %arg9[%c0_36, %c0_37] : memref<64x32xbf16, #tpu.memory_space<vmem>>, vector<64x32xbf16>
    %cst_38 = arith.constant dense<0.000000e+00> : vector<2x32xf32>
    %78 = tpu.matmul %76, %77, %cst_38 {dimension_numbers = #tpu.dot_dimension_numbers<[1], [0], [0], [1], [0, 0, 1, 1], [], []>} : vector<2x64xbf16>, vector<64x32xbf16>, vector<2x32xf32> -> vector<2x32xf32>
    %c0_39 = arith.constant 0 : index
    %c0_40 = arith.constant 0 : index
    %79 = vector.load %arg10[%c0_39, %c0_40] : memref<1x32xf32, #tpu.memory_space<vmem>>, vector<1x32xf32>
    %80 = vector.broadcast %79 : vector<1x32xf32> to vector<2x32xf32>
    %81 = arith.addf %78, %80 : vector<2x32xf32>
    %cst_41 = arith.constant 0.000000e+00 : f32
    %82 = vector.broadcast %cst_41 : f32 to vector<2x32xf32>
    %83 = arith.minimumf %81, %82 : vector<2x32xf32>
    %cst_42 = arith.constant 0.166666672 : f32
    %84 = vector.broadcast %cst_42 : f32 to vector<2x32xf32>
    %85 = arith.mulf %83, %84 : vector<2x32xf32>
    %cst_43 = arith.constant 5.000000e-01 : f32
    %86 = vector.broadcast %cst_43 : f32 to vector<2x32xf32>
    %87 = arith.addf %86, %85 : vector<2x32xf32>
    %88 = arith.mulf %83, %87 : vector<2x32xf32>
    %cst_44 = arith.constant 1.000000e+00 : f32
    %89 = vector.broadcast %cst_44 : f32 to vector<2x32xf32>
    %90 = arith.addf %89, %88 : vector<2x32xf32>
    %91 = arith.mulf %83, %90 : vector<2x32xf32>
    %cst_45 = arith.constant -0.00999999977 : f32
    %92 = vector.broadcast %cst_45 : f32 to vector<2x32xf32>
    %93 = arith.cmpf ogt, %83, %92 : vector<2x32xf32>
    %94 = math.exp %83 : vector<2x32xf32>
    %cst_46 = arith.constant 1.000000e+00 : f32
    %95 = vector.broadcast %cst_46 : f32 to vector<2x32xf32>
    %96 = arith.subf %94, %95 : vector<2x32xf32>
    %97 = arith.select %93, %91, %96 : vector<2x32xi1>, vector<2x32xf32>
    %cst_47 = arith.constant 0.000000e+00 : f32
    %98 = vector.broadcast %cst_47 : f32 to vector<2x32xf32>
    %99 = arith.cmpf ogt, %81, %98 : vector<2x32xf32>
    %100 = arith.select %99, %81, %97 : vector<2x32xi1>, vector<2x32xf32>
    %c0_48 = arith.constant 0 : index
    %c0_49 = arith.constant 0 : index
    %101 = vector.load %arg2[%c0_48, %c0_49] : memref<2x256xf32, #tpu.memory_space<vmem>>, vector<2x256xf32>
    %102 = arith.truncf %100 : vector<2x32xf32> to vector<2x32xbf16>
    %cst_50 = arith.constant 0.000000e+00 : bf16
    %103 = vector.broadcast %cst_50 : bf16 to vector<2x96xbf16>
    %104 = arith.truncf %101 : vector<2x256xf32> to vector<2x256xbf16>
    %105 = tpu.concatenate %102, %103, %104 in 1 : vector<2x32xbf16>, vector<2x96xbf16>, vector<2x256xbf16> -> vector<2x384xbf16>
    %c0_51 = arith.constant 0 : index
    %c0_52 = arith.constant 0 : index
    %106 = vector.load %arg11[%c0_51, %c0_52] : memref<384x1024xbf16, #tpu.memory_space<vmem>>, vector<384x1024xbf16>
    %cst_53 = arith.constant dense<0.000000e+00> : vector<2x1024xf32>
    %107 = tpu.matmul %105, %106, %cst_53 {dimension_numbers = #tpu.dot_dimension_numbers<[1], [0], [0], [1], [0, 0, 1, 1], [], []>} : vector<2x384xbf16>, vector<384x1024xbf16>, vector<2x1024xf32> -> vector<2x1024xf32>
    %c0_54 = arith.constant 0 : index
    %c0_55 = arith.constant 0 : index
    %108 = vector.load %arg12[%c0_54, %c0_55] : memref<1x1024xf32, #tpu.memory_space<vmem>>, vector<1x1024xf32>
    %109 = vector.broadcast %108 : vector<1x1024xf32> to vector<2x1024xf32>
    %110 = arith.addf %107, %109 : vector<2x1024xf32>
    %111 = vector.extract_strided_slice %110 {offsets = [0, 0], sizes = [2, 512], strides = [1, 1]} : vector<2x1024xf32> to vector<2x512xf32>
    %112 = arith.negf %111 : vector<2x512xf32>
    %113 = math.exp %112 : vector<2x512xf32>
    %cst_56 = arith.constant 1.000000e+00 : f32
    %114 = vector.broadcast %cst_56 : f32 to vector<2x512xf32>
    %115 = arith.addf %114, %113 : vector<2x512xf32>
    %116 = arith.divf %114, %115 : vector<2x512xf32>
    %117 = vector.extract_strided_slice %116 {offsets = [0, 0], sizes = [2, 256], strides = [1, 1]} : vector<2x512xf32> to vector<2x256xf32>
    %118 = vector.extract_strided_slice %116 {offsets = [0, 256], sizes = [2, 256], strides = [1, 1]} : vector<2x512xf32> to vector<2x256xf32>
    %119 = vector.extract_strided_slice %110 {offsets = [0, 512], sizes = [2, 256], strides = [1, 1]} : vector<2x1024xf32> to vector<2x256xf32>
    %120 = vector.extract_strided_slice %110 {offsets = [0, 768], sizes = [2, 256], strides = [1, 1]} : vector<2x1024xf32> to vector<2x256xf32>
    %121 = arith.mulf %117, %120 : vector<2x256xf32>
    %122 = arith.addf %119, %121 : vector<2x256xf32>
    %123 = math.tanh %122 : vector<2x256xf32>
    %cst_57 = arith.constant 1.000000e+00 : f32
    %124 = vector.broadcast %cst_57 : f32 to vector<2x256xf32>
    %125 = arith.subf %124, %118 : vector<2x256xf32>
    %126 = arith.mulf %125, %123 : vector<2x256xf32>
    %127 = arith.mulf %118, %101 : vector<2x256xf32>
    %128 = arith.addf %126, %127 : vector<2x256xf32>
    %c0_58 = arith.constant 0 : index
    %c0_59 = arith.constant 0 : index
    %129 = vector.load %arg15[%c0_58, %c0_59] : memref<2x256xf32, #tpu.memory_space<vmem>>, vector<2x256xf32>
    tpu.vector_store %arg15[%c0_58, %c0_59], %128 {strides = array<i32>} : memref<2x256xf32, #tpu.memory_space<vmem>>, vector<2x256xf32>,
    %130 = arith.truncf %128 : vector<2x256xf32> to vector<2x256xbf16>
    %c0_60 = arith.constant 0 : index
    %c0_61 = arith.constant 0 : index
    %131 = vector.load %arg13[%c0_60, %c0_61] : memref<256x4xbf16, #tpu.memory_space<vmem>>, vector<256x4xbf16>
    %cst_62 = arith.constant dense<0.000000e+00> : vector<2x4xf32>
    %132 = tpu.matmul %130, %131, %cst_62 {dimension_numbers = #tpu.dot_dimension_numbers<[1], [0], [0], [1], [0, 0, 1, 1], [], []>} : vector<2x256xbf16>, vector<256x4xbf16>, vector<2x4xf32> -> vector<2x4xf32>
    %c0_63 = arith.constant 0 : index
    %c0_64 = arith.constant 0 : index
    %133 = vector.load %arg14[%c0_63, %c0_64] : memref<1x4xf32, #tpu.memory_space<vmem>>, vector<1x4xf32>
    %134 = vector.broadcast %133 : vector<1x4xf32> to vector<2x4xf32>
    %135 = arith.addf %132, %134 : vector<2x4xf32>
    %136 = vector.extract_strided_slice %135 {offsets = [0, 0], sizes = [2, 3], strides = [1, 1]} : vector<2x4xf32> to vector<2x3xf32>
    %137 = vector.extract_strided_slice %135 {offsets = [0, 3], sizes = [2, 1], strides = [1, 1]} : vector<2x4xf32> to vector<2x1xf32>
    %cst_65 = arith.constant dense<0xFF800000> : vector<2xf32>
    %138 = vector.multi_reduction <maximumf>, %136, %cst_65 [1] : vector<2x3xf32> to vector<2xf32>
    %139 = vector.shape_cast %138 : vector<2xf32> to vector<2x1xf32>
    %140 = vector.broadcast %139 : vector<2x1xf32> to vector<2x3xf32>
    %141 = arith.subf %136, %140 : vector<2x3xf32>
    %142 = math.exp %141 : vector<2x3xf32>
    %cst_66 = arith.constant dense<0.000000e+00> : vector<2xf32>
    %143 = vector.multi_reduction <add>, %142, %cst_66 [1] : vector<2x3xf32> to vector<2xf32>
    %144 = vector.shape_cast %143 : vector<2xf32> to vector<2x1xf32>
    %145 = math.log %144 : vector<2x1xf32>
    %146 = arith.addf %145, %139 : vector<2x1xf32>
    %147 = vector.broadcast %146 : vector<2x1xf32> to vector<2x3xf32>
    %148 = arith.subf %136, %147 : vector<2x3xf32>
    %c0_67 = arith.constant 0 : index
    %c0_68 = arith.constant 0 : index
    %149 = vector.load %arg1[%c0_67, %c0_68] : memref<2x128xf32, #tpu.memory_space<vmem>>, vector<2x128xf32>
    %150 = vector.extract_strided_slice %149 {offsets = [0, 0], sizes = [2, 3], strides = [1, 1]} : vector<2x128xf32> to vector<2x3xf32>
    %151 = arith.addf %148, %150 : vector<2x3xf32>
    %152 = tpu.iota {dimensions = array<i32: 1>} : vector<2x3xi32>
    %cst_69 = arith.constant dense<0xFF800000> : vector<2xf32>
    %153 = vector.multi_reduction <maximumf>, %151, %cst_69 [1] : vector<2x3xf32> to vector<2xf32>
    %154 = vector.shape_cast %153 : vector<2xf32> to vector<2x1xf32>
    %155 = vector.broadcast %154 : vector<2x1xf32> to vector<2x3xf32>
    %156 = arith.cmpf oge, %151, %155 : vector<2x3xf32>
    %157 = arith.sitofp %152 : vector<2x3xi32> to vector<2x3xf32>
    %cst_70 = arith.constant 1.000000e+09 : f32
    %158 = vector.broadcast %cst_70 : f32 to vector<2x3xf32>
    %159 = arith.select %156, %157, %158 : vector<2x3xi1>, vector<2x3xf32>
    %cst_71 = arith.constant dense<0x7F800000> : vector<2xf32>
    %160 = vector.multi_reduction <minimumf>, %159, %cst_71 [1] : vector<2x3xf32> to vector<2xf32>
    %161 = vector.shape_cast %160 : vector<2xf32> to vector<2x1xf32>
    %162 = arith.fptosi %161 : vector<2x1xf32> to vector<2x1xi32>
    %163 = vector.broadcast %162 : vector<2x1xi32> to vector<2x3xi32>
    %164 = arith.cmpi eq, %152, %163 : vector<2x3xi32>
    %cst_72 = arith.constant 0.000000e+00 : f32
    %165 = vector.broadcast %cst_72 : f32 to vector<2x3xf32>
    %166 = arith.select %164, %148, %165 : vector<2x3xi1>, vector<2x3xf32>
    %cst_73 = arith.constant dense<0.000000e+00> : vector<2xf32>
    %167 = vector.multi_reduction <add>, %166, %cst_73 [1] : vector<2x3xf32> to vector<2xf32>
    %168 = vector.shape_cast %167 : vector<2xf32> to vector<2x1xf32>
    %169 = tpu.iota {dimensions = array<i32: 1>} : vector<2x128xi32>
    %c0_i32 = arith.constant 0 : i32
    %170 = vector.broadcast %c0_i32 : i32 to vector<2x128xi32>
    %171 = arith.cmpi eq, %169, %170 : vector<2x128xi32>
    %c1_i32 = arith.constant 1 : i32
    %172 = vector.broadcast %c1_i32 : i32 to vector<2x128xi32>
    %173 = arith.cmpi eq, %169, %172 : vector<2x128xi32>
    %c2_i32 = arith.constant 2 : i32
    %174 = vector.broadcast %c2_i32 : i32 to vector<2x128xi32>
    %175 = arith.cmpi eq, %169, %174 : vector<2x128xi32>
    %cst_74 = arith.constant 0.000000e+00 : f32
    %176 = vector.shape_cast %161 : vector<2x1xf32> to vector<2x1xf32>
    %177 = vector.broadcast %176 : vector<2x1xf32> to vector<2x128xf32>
    %178 = vector.broadcast %cst_74 : f32 to vector<2x128xf32>
    %179 = arith.select %175, %177, %178 : vector<2x128xi1>, vector<2x128xf32>
    %180 = vector.shape_cast %168 : vector<2x1xf32> to vector<2x1xf32>
    %181 = vector.broadcast %180 : vector<2x1xf32> to vector<2x128xf32>
    %182 = arith.select %173, %181, %179 : vector<2x128xi1>, vector<2x128xf32>
    %183 = vector.shape_cast %137 : vector<2x1xf32> to vector<2x1xf32>
    %184 = vector.broadcast %183 : vector<2x1xf32> to vector<2x128xf32>
    %185 = arith.select %171, %184, %182 : vector<2x128xi1>, vector<2x128xf32>
    %c0_75 = arith.constant 0 : index
    %c0_76 = arith.constant 0 : index
    %186 = vector.load %arg16[%c0_75, %c0_76] : memref<2x128xf32, #tpu.memory_space<vmem>>, vector<2x128xf32>
    tpu.vector_store %arg16[%c0_75, %c0_76], %185 {strides = array<i32>} : memref<2x128xf32, #tpu.memory_space<vmem>>, vector<2x128xf32>,
    return
  }
}

</mosaic_0001>

<bundles_post_ra>
// kernel: _forward_jit.1
= control target key start
LH: loop header
LB: loop body
LE: loop exit
PB: predicated region body
PF: predicated region fallthrough
CT: control target
= control target key end

     0   :  { %s3321_s0 = inlined_call_operand.vmem [shape: f32[2,64], index: 0, kind: input, shape index: {}]   ;;  %s3322_s1 = inlined_call_operand.vmem [shape: f32[2,128], index: 1, kind: input, shape index: {}]   ;;  %s3323_s2 = inlined_call_operand.vmem [shape: f32[2,256], index: 2, kind: input, shape index: {}, may-alias: {2,15}]   ;;  %s3324_s3 = inlined_call_operand.vmem [shape: bf16[64,256], index: 3, kind: input, shape index: {}]   ;;  %s3325_s4 = inlined_call_operand.vmem [shape: f32[1,256], index: 4, kind: input, shape index: {}]   ;;  %s3326_s5 = inlined_call_operand.vmem [shape: bf16[256,128], index: 5, kind: input, shape index: {}]   ;;  %s3327_s6 = inlined_call_operand.vmem [shape: f32[1,128], index: 6, kind: input, shape index: {}]   ;;  %s3328_s7 = inlined_call_operand.vmem [shape: bf16[128,64], index: 7, kind: input, shape index: {}]   ;;  %s3329_s8 = inlined_call_operand.vmem [shape: f32[1,64], index: 8, kind: input, shape index: {}]   ;;  %s3330_s9 = inlined_call_operand.vmem [shape: bf16[64,32], index: 9, kind: input, shape index: {}]   ;;  %s3331_s10 = inlined_call_operand.vmem [shape: f32[1,32], index: 10, kind: input, shape index: {}]   ;;  %s3332_s11 = inlined_call_operand.hbm [shape: bf16[384,1024], index: 11, kind: input, shape index: {}]   ;;  %s3333_s12 = inlined_call_operand.vmem [shape: f32[1,1024], index: 12, kind: input, shape index: {}]   ;;  %s3334_s13 = inlined_call_operand.vmem [shape: bf16[256,4], index: 13, kind: input, shape index: {}]   ;;  %s3335_s14 = inlined_call_operand.vmem [shape: f32[1,4], index: 14, kind: input, shape index: {}]   ;;  %s3336_s15 = inlined_call_operand.vmem [shape: f32[2,256], index: 15, kind: output, shape index: {0}, may-alias: {2,15}]   ;;  %s3337_s16 = inlined_call_operand.vmem [shape: f32[2,128], index: 16, kind: output, shape index: {1}]  }
   0x1   :  { %3338 = sst [smem:[#allocation5_spill]] %s3321_s0 }
   0x2   :  { %22 = vsyncpa [#allocation3], 0  ;;  %s2933_s21 = smov [#allocation2]   ;;  %s2909_s25 = scalar_lea.hbm %s3332_s11, 24576 }
   0x3   :  { %s50_s22 = sshll.u32 %s2933_s21, 4  ;;  %p2910_p0 = scmp.ne.s32.totalorder %s3332_s11, %s2909_s25  ;;  %s51_s22 = int_to_ptr.vmem [resolvable:$true] %s50_s22 }
   0x4   :  { %p2913_p1 = scmp.lt.u32.totalorder %s2909_s25, %s3332_s11 }
   0x6   :  { %p2915_p2 = pnand %p2913_p1, %p2910_p0 }
   0x8   :  { %2918 = shalt.err (!%p2915_p2)
}
   0x9   :  { %s2919_s30 = scalar_lea.vmem %s51_s22, 24576  ;;  %p2924_p4 = scmp.lt.s32.totalorder %s51_s22, %s51_s22 }
   0xa   :  { %p2920_p3 = scmp.ne.s32.totalorder %s51_s22, %s2919_s30  ;;  %p2925_p5 = scmp.lt.s32.totalorder %s2919_s30, %s2919_s30 }
   0xc   :  { %p2926_p6 = por %p2925_p5, %p2924_p4 }
   0xe   :  { %p2927_p7 = pnand %p2926_p6, %p2920_p3 }
  0x10   :  { %2930 = shalt.err (!%p2927_p7)
}
  0x11   :  { %s2934_s0 = smov 512   ;;  %s2935_s17 = smov 32  }
  0x12   :  { %56 = dma.hbm_to_vmem [thread:$0]  %s3332_s11, 24576, %s51_s22, [#allocation3], %s2934_s0, %s2934_s0, %s2935_s17  }
  0x13   :  { %2931 = dma.done.wait [#allocation3], 24576  }
  0x14   :  { %2932 = vsyncadd [#allocation3], 4294942720  ;;  %v2936_v0 = vmov 0   ;;  %v2818_v1 = vld [vmem:[%s3324_s3 + $0x4] ss:$8 sps:$4 sm:$0xff]   ;;  %s3339_s27 = sld [smem:[#allocation5_spill]]  ;;  %v79_v29 = vlaneseq }
  0x15   :  { %165 = vmatprep.mubr.bf16.mxu0 %v2936_v0  ;;  %v2820_v2 = vld [vmem:[%s3324_s3] ss:$8 sps:$4 sm:$0xff]   ;;  %133 = vmatprep.subr.bf16.mxu0 %v2818_v1  ;;  %v2821_v3 = vld [vmem:[%s3324_s3 + $0x14] ss:$8 sps:$4 sm:$0xff]   ;;  %v2823_v4 = vld [vmem:[%s3324_s3 + $0x10] ss:$8 sps:$4 sm:$0xff]  }
  0x16   :  { %134 = vmatpush1.bf16.msra.mxu0 %v2820_v2  ;;  %v2824_v5 = vld [vmem:[%s3324_s3 + $0x24] ss:$8 sps:$4 sm:$0xff]   ;;  %v2826_v6 = vld [vmem:[%s3324_s3 + $0x20] ss:$8 sps:$4 sm:$0xff]   ;;  %v2827_v7 = vld [vmem:[%s3324_s3 + $0x34] ss:$8 sps:$4 sm:$0xff]  }
  0x17   :  { %135 = vmatprep.subr.bf16.mxu0 %v2821_v3  ;;  %v2830_v8 = vld [vmem:[%s3326_s5 + $0x40] sm:$0xff]   ;;  %v2832_v10 = vld [vmem:[%s3326_s5 + $0x48] sm:$0xff]   ;;  %v2829_v11 = vld [vmem:[%s3324_s3 + $0x30] ss:$8 sps:$4 sm:$0xff]   ;;  %vm129_vm0 = vcmask 523264   ;;  %v2937_v28 = vmov 0.0  }
  0x18   :  { %v2831_v9 = vld [vmem:[%s3326_s5] sm:$0xff]   ;;  %2699 = vmatprep.subr.bf16.mxu1 %v2830_v8  ;;  %v2833_v13 = vld [vmem:[%s3326_s5 + $0x8] sm:$0xff]   ;;  %v2834_v15 = vld [vmem:[%s3326_s5 + $0x50] sm:$0xff]   ;;  %v3120_v30 = vshrl.u32 %v79_v29, 7  ;;  %vm2938_vm5 = vmmov 0   ;;  %vm626_vm12 = vcmask 261120  }
  0x19   :  { %2700 = vmatpush3.bf16.msra.mxu1 %v2831_v9  ;;  %v2835_v16 = vld [vmem:[%s3326_s5 + $0x10] sm:$0xff]   ;;  %v2836_v17 = vld [vmem:[%s3326_s5 + $0x58] sm:$0xff]   ;;  %v2838_v19 = vld [vmem:[%s3326_s5 + $0x60] sm:$0xff]   ;;  %vm2380_vm13 = vcmask 17408  }
  0x1a   :  { %136 = vmatpush1.bf16.msra.mxu0 %v2823_v4  ;;  %v67_v12 = vld [vmem:[%s3339_s27] sm:$0x3]  ;;  %2701 = vmatprep.subr.bf16.mxu1 %v2832_v10  ;;  %v2837_v18 = vld [vmem:[%s3326_s5 + $0x18] sm:$0xff]   ;;  %v2840_v21 = vld [vmem:[%s3326_s5 + $0x68] sm:$0xff]   ;;  %v81_v31 = vsub.s32 0, %v3120_v30  ;;  %v85_v33 = vsub.s32 1, %v3120_v30 }
  0x1b   :  { %137 = vmatprep.subr.bf16.mxu0 %v2824_v5  ;;  %v68_v14 = vpack.c.bf16 %v67_v12, %v67_v12  ;;  %v2839_v20 = vld [vmem:[%s3326_s5 + $0x20] sm:$0xff]   ;;  %v2841_v22 = vld [vmem:[%s3326_s5 + $0x28] sm:$0xff]   ;;  %v2842_v23 = vld [vmem:[%s3326_s5 + $0x70] sm:$0xff]  }
  0x1c   :  { %v2843_v24 = vld [vmem:[%s3326_s5 + $0x30] sm:$0xff]   ;;  %v2844_v25 = vld [vmem:[%s3326_s5 + $0x78] sm:$0xff]   ;;  %v2846_v27 = vld [vmem:[%s3328_s7] sm:$0xff]  }
  0x1d   :  { %2702 = vmatpush3.bf16.msra.mxu1 %v2833_v13  ;;  %v2845_v26 = vld [vmem:[%s3326_s5 + $0x38] sm:$0xff]   ;;  %v77_v32 = vld [vmem:[%s3325_s4] sm:$0x3]  ;;  %v2847_v3 = vld [vmem:[%s3328_s7 + $0x8] sm:$0xff]  }
  0x1e   :  { %138 = vmatpush1.bf16.msra.mxu0 %v2826_v6  ;;  %2703 = vmatprep.subr.bf16.mxu1 %v2834_v15  ;;  %v82_v34 = vrot.slane %v77_v32, %v81_v31  ;;  %v86_v35 = vrot.slane %v77_v32, %v85_v33  ;;  %v2848_v4 = vld [vmem:[%s3328_s7 + $0x10] sm:$0xff]   ;;  %v2849_v5 = vld [vmem:[%s3328_s7 + $0x18] sm:$0xff]   ;;  %v2850_v6 = vld [vmem:[%s3328_s7 + $0x20] sm:$0xff]  }
  0x1f   :  { %139 = vmatprep.subr.bf16.mxu0 %v2827_v7  ;;  %v2851_v7 = vld [vmem:[%s3328_s7 + $0x28] sm:$0xff]   ;;  %v2852_v8 = vld [vmem:[%s3328_s7 + $0x30] sm:$0xff]   ;;  %v2853_v9 = vld [vmem:[%s3328_s7 + $0x38] sm:$0xff]  }
  0x21   :  { %2704 = vmatpush3.bf16.msra.mxu1 %v2835_v16 }
  0x22   :  { %140 = vmatpush1.bf16.msra.mxu0 %v2829_v11  ;;  %2705 = vmatprep.subr.bf16.mxu1 %v2836_v17  ;;  %v2445_v11 = vld [vmem:[%s3327_s6] ss:$0 sm:$0xff] }
  0x23   :  { %2757 = vmatprep.subr.bf16.mxu0 %v2937_v28 }
  0x25   :  { %2442 = vmatmul.mubr.msk.bf16.vlgmr.msra.gmra.mrb[0].mxu0 %vm129_vm0, %v68_v14  ;;  %2706 = vmatpush3.bf16.msra.mxu1 %v2837_v18 }
  0x26   :  { %2707 = vmatprep.subr.bf16.mxu1 %v2838_v19  ;;  %2758 = vmatpush3.bf16.msra.mxu0 %v2846_v27 }
  0x27   :  { %2759 = vmatprep.subr.bf16.mxu0 %v2937_v28  ;;  %2773 = vmatprep.mubr.msk.bf16.mxu0 %vm2938_vm5, %v2937_v28 }
  0x29   :  { %2708 = vmatpush3.bf16.msra.mxu1 %v2839_v20 }
  0x2a   :  { %2709 = vmatprep.subr.bf16.mxu1 %v2840_v21  ;;  %2760 = vmatpush3.bf16.msra.mxu0 %v2847_v3  ;;  %v684_v3 = vld [vmem:[#allocation2 + $0x1a8] sm:$0xff] }
  0x2b   :  { %2761 = vmatprep.subr.bf16.mxu0 %v2937_v28 }
  0x2d   :  { %2710 = vmatpush3.bf16.msra.mxu1 %v2841_v22 }
  0x2e   :  { %2711 = vmatprep.subr.bf16.mxu1 %v2842_v23  ;;  %2762 = vmatpush3.bf16.msra.mxu0 %v2848_v4 }
  0x2f   :  { %2763 = vmatprep.subr.bf16.mxu0 %v2937_v28 }
  0x31   :  { %2712 = vmatpush3.bf16.msra.mxu1 %v2843_v24 }
  0x32   :  { %2713 = vmatprep.subr.bf16.mxu1 %v2844_v25  ;;  %2764 = vmatpush3.bf16.msra.mxu0 %v2849_v5 }
  0x33   :  { %2765 = vmatprep.subr.bf16.mxu0 %v2937_v28 }
  0x35   :  { %2714 = vmatpush3.bf16.msra.mxu1 %v2845_v26 }
  0x36   :  { %2766 = vmatpush3.bf16.msra.mxu0 %v2850_v6  ;;  %v688_v6 = vld [vmem:[#allocation2 + $0x1c8] sm:$0xff] }
  0x37   :  { %2767 = vmatprep.subr.bf16.mxu0 %v2937_v28 }
  0x3a   :  { %2768 = vmatpush3.bf16.msra.mxu0 %v2851_v7  ;;  %v692_v7 = vld [vmem:[#allocation2 + $0x1e8] sm:$0xff] }
  0x3b   :  { %2769 = vmatprep.subr.bf16.mxu0 %v2937_v28 }
  0x3e   :  { %2770 = vmatpush3.bf16.msra.mxu0 %v2852_v8  ;;  %v2540_v8 = vcombine.high %v688_v6, %v692_v7 }
  0x3f   :  { %2771 = vmatprep.subr.bf16.mxu0 %v2937_v28 }
  0x42   :  { %2772 = vmatpush3.bf16.msra.mxu0 %v2853_v9  ;;  %v2539_v9 = vcombine.low %v688_v6, %v692_v7 }
  0x43   :  { %2777 = vmatprep.subr.bf16.mxu0 %v2937_v28 }
  0xf8   :  { %v167_v36 = vpop.f32.mrb[0].mxu0 }
  0xf9   :  { %v168_v37 = vadd.f32 %v167_v36, %v82_v34  ;;  %v169_v38 = vpop.f32.mrb[1].mxu0  ;;  %v2854_v34 = vld [vmem:[%s3330_s9] sm:$0xff]   ;;  %v2856_v36 = vld [vmem:[%s3330_s9 + $0x10] sm:$0xff]  }
  0xfa   :  { %v170_v39 = vadd.f32 %v169_v38, %v86_v35  ;;  %v171_v40 = vpop.f32.mrb[2].mxu0  ;;  %v2855_v35 = vld [vmem:[%s3330_s9 + $0x8] sm:$0xff]   ;;  %v3181_v38 = vld [vmem:[#allocation2] sm:$0xff] }
  0xfb   :  { %v174_v41 = vmin.f32 %v168_v37, 0.0  ;;  %v172_v42 = vpop.f32.mrb[3].mxu0  ;;  %vm196_vm2 = vcmp.gt.f32.partialorder %v168_v37, 0.0  ;;  %v632_v40 = vld [vmem:[#allocation2 + $0x8] sm:$0xff] }
  0xfc   :  { %v175_v43 = vmin.f32 %v170_v39, 0.0  ;;  %vm197_vm4 = vcmp.gt.f32.partialorder %v170_v39, 0.0 }
  0xfd   :  { %v176_v44 = vmul.f32 0.16666667, %v174_v41  ;;  %v188_v45 = vmul.f32 1.442695, %v174_v41  ;;  %vm186_vm1 = vcmp.gt.f32.partialorder %v174_v41, -0.01 }
  0xfe   :  { %v177_v46 = vmul.f32 0.16666667, %v175_v43  ;;  %v190_v47 = vmul.f32 1.442695, %v175_v43  ;;  %vm187_vm3 = vcmp.gt.f32.partialorder %v175_v43, -0.01 }
  0xff   :  { %v178_v48 = vadd.f32 0.5, %v176_v44  ;;  %2874 = vpow2.f32 %v188_v45 }
 0x100   :  { %v179_v49 = vadd.f32 0.5, %v177_v46  ;;  %2876 = vpow2.f32 %v190_v47  ;;  %v644_v46 = vld [vmem:[#allocation2 + $0x68] sm:$0xff] }
 0x101   :  { %v180_v50 = vmul.f32 %v178_v48, %v174_v41 }
 0x102   :  { %v181_v51 = vmul.f32 %v179_v49, %v175_v43  ;;  %v648_v49 = vld [vmem:[#allocation2 + $0x88] sm:$0xff] }
 0x103   :  { %v182_v52 = vadd.f32 1.0, %v180_v50  ;;  %v652_v50 = vld [vmem:[#allocation2 + $0xa8] sm:$0xff] }
 0x104   :  { %v183_v53 = vadd.f32 1.0, %v181_v51  ;;  %v2500_v51 = vcombine.high %v648_v49, %v652_v50 }
 0x105   :  { %v184_v56 = vmul.f32 %v182_v52, %v174_v41  ;;  %v2499_v52 = vcombine.low %v648_v49, %v652_v50  ;;  %v647_v50 = vld [vmem:[#allocation2 + $0x80] sm:$0xff] }
 0x106   :  { %v185_v58 = vmul.f32 %v183_v53, %v175_v43  ;;  %v636_v43 = vld [vmem:[#allocation2 + $0x28] sm:$0xff] }
 0x107   :  { %v2483_v44 = vcombine.low %v632_v40, %v636_v43  ;;  %v2484_v45 = vcombine.high %v632_v40, %v636_v43  ;;  %v656_v53 = vld [vmem:[#allocation2 + $0xc8] sm:$0xff] }
 0x109   :  { %v2875_v54 = vpop.eup %2874  ;;  %1907 = vmatprep.subr.bf16.mxu1 %v2484_v45  ;;  %v639_v45 = vld [vmem:[#allocation2 + $0x40] sm:$0xff] }
 0x10a   :  { %v2877_v55 = vpop.eup %2876  ;;  %v2443_v57 = vadd.f32 -1.0, %v2875_v54  ;;  %v660_v54 = vld [vmem:[#allocation2 + $0xe8] sm:$0xff] }
 0x10b   :  { %v2444_v59 = vadd.f32 -1.0, %v2877_v55  ;;  %v2508_v55 = vcombine.high %v656_v53, %v660_v54 }
 0x10c   :  { %v194_v60 = vsel %vm186_vm1, %v184_v56, %v2443_v57  ;;  %v2507_v56 = vcombine.low %v656_v53, %v660_v54  ;;  %v664_v57 = vld [vmem:[#allocation2 + $0x108] sm:$0xff]  ;;  %v655_v54 = vld [vmem:[#allocation2 + $0xc0] sm:$0xff] }
 0x10d   :  { %v195_v61 = vsel %vm187_vm3, %v185_v58, %v2444_v59  ;;  %v198_v62 = vsel %vm196_vm2, %v168_v37, %v194_v60  ;;  %v2857_v37 = vld [vmem:[%s3330_s9 + $0x18] sm:$0xff]   ;;  %v668_v58 = vld [vmem:[#allocation2 + $0x128] sm:$0xff] }
 0x10e   :  { %v199_v63 = vsel %vm197_vm4, %v170_v39, %v195_v61  ;;  %v200_v2 = vpack.c.bf16 %v198_v62, %v198_v62  ;;  %v3183_v39 = vld [vmem:[#allocation2 + $0x20] sm:$0xff]  ;;  %v2516_v59 = vcombine.high %v664_v57, %v668_v58  ;;  %v2515_v60 = vcombine.low %v664_v57, %v668_v58  ;;  %v672_v61 = vld [vmem:[#allocation2 + $0x148] sm:$0xff] }
 0x10f   :  { %v201_v1 = vpack.c.bf16 %v199_v63, %v199_v63  ;;  %v2481_v41 = vcombine.low %v3181_v38, %v3183_v39  ;;  %v2482_v42 = vcombine.high %v3181_v38, %v3183_v39  ;;  %v676_v62 = vld [vmem:[#allocation2 + $0x168] sm:$0xff]  ;;  %v663_v58 = vld [vmem:[#allocation2 + $0x100] sm:$0xff] }
 0x110   :  { %v2524_v63 = vcombine.high %v672_v61, %v676_v62 }
 0x111   :  { %369 = vmatprep.mubr.bf16.mxu1 %v201_v1  ;;  %v2523_v1 = vcombine.low %v672_v61, %v676_v62  ;;  %v671_v62 = vld [vmem:[#allocation2 + $0x140] sm:$0xff] }
 0x112   :  { %370 = vmatmul.mubr.bf16.vlgmr.msra.gmra.mrb[0].mxu1 %v200_v2  ;;  %v680_v2 = vld [vmem:[#allocation2 + $0x188] sm:$0xff] }
 0x113   :  { %1908 = vmatpush1.bf16.msra.mxu1 %v2483_v44  ;;  %v2532_v4 = vcombine.high %v680_v2, %v684_v3  ;;  %v2531_v5 = vcombine.low %v680_v2, %v684_v3 }
 0x1e5   :  { %v2715_v10 = vpop.f32.mrb[0].mxu1 }
 0x1e6   :  { %v2716_v12 = vpop.f32.mrb[1].mxu1 }
 0x1e7   :  { %v2717_v13 = vadd.f32 %v2716_v12, %v2715_v10  ;;  %v2718_v14 = vpop.f32.mrb[2].mxu1  ;;  %v696_v10 = vld [vmem:[#allocation2 + $0x208] sm:$0xff] }
 0x1e8   :  { %v2719_v15 = vpop.f32.mrb[3].mxu1  ;;  %v704_v14 = vld [vmem:[#allocation2 + $0x248] sm:$0xff] }
 0x1e9   :  { %v372_v16 = vadd.f32 %v2717_v13, %v2445_v11  ;;  %v700_v11 = vld [vmem:[#allocation2 + $0x228] sm:$0xff] }
 0x1ea   :  { %v2548_v12 = vcombine.high %v696_v10, %v700_v11  ;;  %v2547_v13 = vcombine.low %v696_v10, %v700_v11  ;;  %v708_v15 = vld [vmem:[#allocation2 + $0x268] sm:$0xff] }
 0x1eb   :  { %v377_v17 = vmin.f32 %v372_v16, 0.0  ;;  %vm388_vm7 = vcmp.gt.f32.partialorder %v372_v16, 0.0 }
 0x1ed   :  { %v378_v18 = vmul.f32 0.16666667, %v377_v17  ;;  %v384_v19 = vmul.f32 1.442695, %v377_v17  ;;  %vm383_vm6 = vcmp.gt.f32.partialorder %v377_v17, -0.01 }
 0x1ef   :  { %v379_v20 = vadd.f32 0.5, %v378_v18  ;;  %2878 = vpow2.f32 %v384_v19  ;;  %v712_v18 = vld [vmem:[#allocation2 + $0x288] sm:$0xff] }
 0x1f0   :  { %v716_v19 = vld [vmem:[#allocation2 + $0x2a8] sm:$0xff] }
 0x1f1   :  { %v380_v21 = vmul.f32 %v379_v20, %v377_v17  ;;  %v2564_v20 = vcombine.high %v712_v18, %v716_v19 }
 0x1f3   :  { %v381_v22 = vadd.f32 1.0, %v380_v21  ;;  %v2563_v21 = vcombine.low %v712_v18, %v716_v19 }
 0x1f5   :  { %v382_v24 = vmul.f32 %v381_v22, %v377_v17  ;;  %v2555_v17 = vcombine.low %v704_v14, %v708_v15  ;;  %v2463_v22 = vld [vmem:[%s3329_s8] ss:$0 sm:$0xff] }
 0x1f9   :  { %v2879_v23 = vpop.eup %2878 }
 0x1fa   :  { %v2462_v25 = vadd.f32 -1.0, %v2879_v23 }
 0x1fc   :  { %v387_v26 = vsel %vm383_vm6, %v382_v24, %v2462_v25 }
 0x1fd   :  { %v389_v27 = vsel %vm388_vm7, %v372_v16, %v387_v26  ;;  %v2556_v16 = vcombine.high %v704_v14, %v708_v15 }
 0x1fe   :  { %v390_v32 = vpack.c.bf16 %v389_v27, %v389_v27 }
 0x200   :  { %2774 = vmatmul.mubr.bf16.vlgmr.msra.gmra.mrb[4].mxu0 %v390_v32 }
 0x201   :  { %2785 = vmatprep.mubr.msk.bf16.mxu0 %vm2938_vm5, %v2937_v28  ;;  %2778 = vmatpush3.bf16.msra.mxu0 %v2854_v34 }
 0x202   :  { %2779 = vmatprep.subr.bf16.mxu0 %v2937_v28 }
 0x205   :  { %2780 = vmatpush3.bf16.msra.mxu0 %v2855_v35 }
 0x206   :  { %2781 = vmatprep.subr.bf16.mxu0 %v2937_v28 }
 0x209   :  { %2782 = vmatpush3.bf16.msra.mxu0 %v2856_v36 }
 0x20a   :  { %2783 = vmatprep.subr.bf16.mxu0 %v2937_v28  ;;  %v640_v28 = vld [vmem:[#allocation2 + $0x48] sm:$0xff] }
 0x20b   :  { %v2492_v47 = vcombine.high %v640_v28, %v644_v46  ;;  %v2491_v48 = vcombine.low %v640_v28, %v644_v46  ;;  %v643_v28 = vld [vmem:[#allocation2 + $0x60] sm:$0xff] }
 0x20c   :  { %v2490_v49 = vcombine.high %v639_v45, %v643_v28 }
 0x20d   :  { %2784 = vmatpush3.bf16.msra.mxu0 %v2857_v37  ;;  %1909 = vmatprep.subr.bf16.mxu1 %v2492_v47 }
 0x20e   :  { %1825 = vmatprep.subr.bf16.mxu0 %v2482_v42  ;;  %1910 = vmatpush1.bf16.msra.mxu1 %v2491_v48 }
 0x20f   :  { %1911 = vmatprep.subr.bf16.mxu1 %v2500_v51  ;;  %v651_v51 = vld [vmem:[#allocation2 + $0xa0] sm:$0xff] }
 0x210   :  { %v2498_v53 = vcombine.high %v647_v50, %v651_v51 }
 0x212   :  { %1912 = vmatpush1.bf16.msra.mxu1 %v2499_v52  ;;  %v2489_v52 = vcombine.low %v639_v45, %v643_v28  ;;  %v735_v45 = vld [vmem:[#allocation2 + $0x340] sm:$0xff] }
 0x213   :  { %1913 = vmatprep.subr.bf16.mxu1 %v2508_v55  ;;  %v659_v55 = vld [vmem:[#allocation2 + $0xe0] sm:$0xff] }
 0x214   :  { %v2506_v57 = vcombine.high %v655_v54, %v659_v55  ;;  %v739_v28 = vld [vmem:[#allocation2 + $0x360] sm:$0xff] }
 0x216   :  { %1914 = vmatpush1.bf16.msra.mxu1 %v2507_v56  ;;  %v2497_v56 = vcombine.low %v647_v50, %v651_v51 }
 0x217   :  { %1915 = vmatprep.subr.bf16.mxu1 %v2516_v59  ;;  %v667_v59 = vld [vmem:[#allocation2 + $0x120] sm:$0xff] }
 0x218   :  { %v2514_v61 = vcombine.high %v663_v58, %v667_v59  ;;  %v2513_v38 = vcombine.low %v663_v58, %v667_v59 }
 0x21a   :  { %1916 = vmatpush1.bf16.msra.mxu1 %v2515_v60  ;;  %v2505_v60 = vcombine.low %v655_v54, %v659_v55  ;;  %v744_v54 = vld [vmem:[#allocation2 + $0x388] sm:$0xff] }
 0x21b   :  { %1917 = vmatprep.subr.bf16.mxu1 %v2524_v63  ;;  %v675_v63 = vld [vmem:[#allocation2 + $0x160] sm:$0xff] }
 0x21c   :  { %v2522_v39 = vcombine.high %v671_v62, %v675_v63  ;;  %v2521_v2 = vcombine.low %v671_v62, %v675_v63  ;;  %v752_v62 = vld [vmem:[#allocation2 + $0x3c8] sm:$0xff] }
 0x21e   :  { %1918 = vmatpush1.bf16.msra.mxu1 %v2523_v1  ;;  %v683_v1 = vld [vmem:[#allocation2 + $0x1a0] sm:$0xff] }
 0x21f   :  { %1919 = vmatprep.subr.bf16.mxu1 %v2532_v4  ;;  %v687_v4 = vld [vmem:[#allocation2 + $0x1c0] sm:$0xff] }
 0x222   :  { %1920 = vmatpush1.bf16.msra.mxu1 %v2531_v5  ;;  %v691_v5 = vld [vmem:[#allocation2 + $0x1e0] sm:$0xff] }
 0x223   :  { %1921 = vmatprep.subr.bf16.mxu1 %v2540_v8  ;;  %v2538_v7 = vcombine.high %v687_v4, %v691_v5  ;;  %v695_v8 = vld [vmem:[#allocation2 + $0x200] sm:$0xff]  ;;  %v2537_v10 = vcombine.low %v687_v4, %v691_v5 }
 0x224   :  { %v763_v4 = vld [vmem:[#allocation2 + $0x420] sm:$0xff] }
 0x226   :  { %1922 = vmatpush1.bf16.msra.mxu1 %v2539_v9  ;;  %v699_v9 = vld [vmem:[#allocation2 + $0x220] sm:$0xff] }
 0x227   :  { %1923 = vmatprep.subr.bf16.mxu1 %v2548_v12  ;;  %v2546_v11 = vcombine.high %v695_v8, %v699_v9  ;;  %v703_v12 = vld [vmem:[#allocation2 + $0x240] sm:$0xff]  ;;  %v2545_v14 = vcombine.low %v695_v8, %v699_v9  ;;  %v764_v8 = vld [vmem:[#allocation2 + $0x428] sm:$0xff] }
 0x22a   :  { %1924 = vmatpush1.bf16.msra.mxu1 %v2547_v13  ;;  %v707_v13 = vld [vmem:[#allocation2 + $0x260] sm:$0xff] }
 0x22b   :  { %1925 = vmatprep.subr.bf16.mxu1 %v2556_v16  ;;  %v2554_v15 = vcombine.high %v703_v12, %v707_v13  ;;  %v711_v16 = vld [vmem:[#allocation2 + $0x280] sm:$0xff]  ;;  %v2553_v18 = vcombine.low %v703_v12, %v707_v13 }
 0x22c   :  { %v2473_v12 = vld [vmem:[%s3331_s10] ss:$0 sm:$0xff] }
 0x22e   :  { %1926 = vmatpush1.bf16.msra.mxu1 %v2555_v17  ;;  %v715_v17 = vld [vmem:[#allocation2 + $0x2a0] sm:$0xff] }
 0x22f   :  { %1927 = vmatprep.subr.bf16.mxu1 %v2564_v20  ;;  %v2562_v19 = vcombine.high %v711_v16, %v715_v17  ;;  %v2561_v20 = vcombine.low %v711_v16, %v715_v17 }
 0x232   :  { %1928 = vmatpush1.bf16.msra.mxu1 %v2563_v21  ;;  %v719_v21 = vld [vmem:[#allocation2 + $0x2c0] sm:$0xff] }
 0x2d3   :  { %v496_v23 = vpop.f32.mrb[4].mxu0 }
 0x2d4   :  { %v497_v24 = vadd.f32 %v2463_v22, %v496_v23  ;;  %v2775_v25 = vpop.f32.mrb[5].mxu0  ;;  %v723_v22 = vld [vmem:[#allocation2 + $0x2e0] sm:$0xff]  ;;  %v720_v23 = vld [vmem:[#allocation2 + $0x2c8] sm:$0xff] }
 0x2d5   :  { %v499_v26 = vpop.f32.mrb[6].mxu0  ;;  %v724_v25 = vld [vmem:[#allocation2 + $0x2e8] sm:$0xff] }
 0x2d6   :  { %v502_v27 = vmin.f32 %v497_v24, 0.0  ;;  %v2776_v32 = vpop.f32.mrb[7].mxu0  ;;  %vm513_vm9 = vcmp.gt.f32.partialorder %v497_v24, 0.0  ;;  %v2569_v26 = vcombine.low %v719_v21, %v723_v22 }
 0x2d7   :  { %v2572_v32 = vcombine.high %v720_v23, %v724_v25 }
 0x2d8   :  { %v503_v34 = vmul.f32 0.16666667, %v502_v27  ;;  %v509_v35 = vmul.f32 1.442695, %v502_v27  ;;  %vm508_vm8 = vcmp.gt.f32.partialorder %v502_v27, -0.01 }
 0x2d9   :  { %1929 = vmatprep.subr.bf16.mxu1 %v2572_v32  ;;  %v771_v32 = vld [vmem:[#allocation2 + $0x460] sm:$0xff] }
 0x2da   :  { %v504_v36 = vadd.f32 0.5, %v503_v34  ;;  %2880 = vpow2.f32 %v509_v35  ;;  %v727_v34 = vld [vmem:[#allocation2 + $0x300] sm:$0xff] }
 0x2db   :  { %v731_v35 = vld [vmem:[#allocation2 + $0x320] sm:$0xff] }
 0x2dc   :  { %v505_v37 = vmul.f32 %v504_v36, %v502_v27  ;;  %v728_v36 = vld [vmem:[#allocation2 + $0x308] sm:$0xff] }
 0x2de   :  { %v506_v40 = vadd.f32 1.0, %v505_v37  ;;  %v2578_v37 = vcombine.high %v727_v34, %v731_v35 }
 0x2e0   :  { %v507_v43 = vmul.f32 %v506_v40, %v502_v27  ;;  %v2571_v27 = vcombine.low %v720_v23, %v724_v25  ;;  %v732_v40 = vld [vmem:[#allocation2 + $0x328] sm:$0xff] }
 0x2e2   :  { %1930 = vmatpush1.bf16.msra.mxu1 %v2571_v27  ;;  %v767_v27 = vld [vmem:[#allocation2 + $0x440] sm:$0xff] }
 0x2e4   :  { %v2881_v42 = vpop.eup %2880 }
 0x2e5   :  { %v2472_v44 = vadd.f32 -1.0, %v2881_v42  ;;  %v2577_v42 = vcombine.low %v727_v34, %v731_v35  ;;  %v768_v34 = vld [vmem:[#allocation2 + $0x448] sm:$0xff] }
 0x2e6   :  { %v772_v35 = vld [vmem:[#allocation2 + $0x468] sm:$0xff] }
 0x2e7   :  { %v512_v46 = vsel %vm508_vm8, %v507_v43, %v2472_v44  ;;  %v2579_v43 = vcombine.low %v728_v36, %v732_v40  ;;  %v2580_v44 = vcombine.high %v728_v36, %v732_v40 }
 0x2e8   :  { %v514_v47 = vsel %vm513_vm9, %v497_v24, %v512_v46  ;;  %v2570_v24 = vcombine.high %v719_v21, %v723_v22  ;;  %v736_v46 = vld [vmem:[#allocation2 + $0x348] sm:$0xff] }
 0x2e9   :  { %v515_v48 = vpack.c.bf16 %v514_v47, %v514_v47  ;;  %1931 = vmatprep.subr.bf16.mxu1 %v2580_v44  ;;  %v2586_v47 = vcombine.high %v735_v45, %v739_v28  ;;  %v775_v44 = vld [vmem:[#allocation2 + $0x480] sm:$0xff] }
 0x2ea   :  { %1932 = vmatpush1.bf16.msra.mxu1 %v2579_v43  ;;  %v2620_v43 = vcombine.high %v768_v34, %v772_v35 }
 0x2eb   :  { %2786 = vmatmul.mubr.msk.bf16.vlgmr.msra.gmra.mrb[8].mxu0 %vm129_vm0, %v515_v48  ;;  %v740_v48 = vld [vmem:[#allocation2 + $0x368] sm:$0xff] }
 0x2ec   :  { %1826 = vmatpush1.bf16.msra.mxu0 %v2481_v41  ;;  %v679_v41 = vld [vmem:[#allocation2 + $0x180] sm:$0xff]  ;;  %v2587_v50 = vcombine.low %v736_v46, %v740_v48  ;;  %v2588_v51 = vcombine.high %v736_v46, %v740_v48  ;;  %v780_v46 = vld [vmem:[#allocation2 + $0x4a8] sm:$0xff]  ;;  %v2619_v48 = vcombine.low %v768_v34, %v772_v35  ;;  %v761_v34 = vld [vmem:[#allocation2 + $0x410] sm:$0xff] }
 0x2ed   :  { %1827 = vmatprep.subr.bf16.mxu0 %v2490_v49  ;;  %v2530_v3 = vcombine.high %v679_v41, %v683_v1  ;;  %v2529_v6 = vcombine.low %v679_v41, %v683_v1  ;;  %v2585_v49 = vcombine.low %v735_v45, %v739_v28  ;;  %v779_v45 = vld [vmem:[#allocation2 + $0x4a0] sm:$0xff]  ;;  %v776_v28 = vld [vmem:[#allocation2 + $0x488] sm:$0xff]  ;;  %v765_v35 = vld [vmem:[#allocation2 + $0x430] sm:$0xff] }
 0x2ee   :  { %1933 = vmatprep.subr.bf16.mxu1 %v2588_v51  ;;  %v783_v51 = vld [vmem:[#allocation2 + $0x4c0] sm:$0xff] }
 0x2ef   :  { %1934 = vmatpush1.bf16.msra.mxu1 %v2587_v50  ;;  %v2628_v50 = vcombine.high %v776_v28, %v780_v46 }
 0x2f0   :  { %1828 = vmatpush1.bf16.msra.mxu0 %v2489_v52  ;;  %v743_v52 = vld [vmem:[#allocation2 + $0x380] sm:$0xff] }
 0x2f1   :  { %1829 = vmatprep.subr.bf16.mxu0 %v2498_v53  ;;  %v747_v53 = vld [vmem:[#allocation2 + $0x3a0] sm:$0xff] }
 0x2f2   :  { %v2594_v55 = vcombine.high %v743_v52, %v747_v53 }
 0x2f4   :  { %1830 = vmatpush1.bf16.msra.mxu0 %v2497_v56  ;;  %v748_v56 = vld [vmem:[#allocation2 + $0x3a8] sm:$0xff] }
 0x2f5   :  { %1831 = vmatprep.subr.bf16.mxu0 %v2506_v57  ;;  %v2593_v57 = vcombine.low %v743_v52, %v747_v53  ;;  %v2595_v58 = vcombine.low %v744_v54, %v748_v56  ;;  %v2596_v59 = vcombine.high %v744_v54, %v748_v56  ;;  %v787_v52 = vld [vmem:[#allocation2 + $0x4e0] sm:$0xff]  ;;  %v784_v53 = vld [vmem:[#allocation2 + $0x4c8] sm:$0xff]  ;;  %v2627_v56 = vcombine.low %v776_v28, %v780_v46  ;;  %v645_v28 = vld [vmem:[#allocation2 + $0x70] sm:$0xff] }
 0x2f6   :  { %v788_v54 = vld [vmem:[#allocation2 + $0x4e8] sm:$0xff]  ;;  %v769_v46 = vld [vmem:[#allocation2 + $0x450] sm:$0xff] }
 0x2f7   :  { %1935 = vmatprep.subr.bf16.mxu1 %v2596_v59  ;;  %v791_v59 = vld [vmem:[#allocation2 + $0x500] sm:$0xff] }
 0x2f8   :  { %1832 = vmatpush1.bf16.msra.mxu0 %v2505_v60  ;;  %v751_v60 = vld [vmem:[#allocation2 + $0x3c0] sm:$0xff]  ;;  %1936 = vmatpush1.bf16.msra.mxu1 %v2595_v58  ;;  %v2636_v58 = vcombine.high %v784_v53, %v788_v54 }
 0x2f9   :  { %1833 = vmatprep.subr.bf16.mxu0 %v2514_v61  ;;  %v755_v61 = vld [vmem:[#allocation2 + $0x3e0] sm:$0xff] }
 0x2fa   :  { %v2602_v63 = vcombine.high %v751_v60, %v755_v61 }
 0x2fc   :  { %1834 = vmatpush1.bf16.msra.mxu0 %v2513_v38  ;;  %v756_v38 = vld [vmem:[#allocation2 + $0x3e8] sm:$0xff] }
 0x2fd   :  { %1835 = vmatprep.subr.bf16.mxu0 %v2522_v39  ;;  %v2601_v39 = vcombine.low %v751_v60, %v755_v61  ;;  %v2603_v41 = vcombine.low %v752_v62, %v756_v38  ;;  %v2604_v1 = vcombine.high %v752_v62, %v756_v38  ;;  %v795_v60 = vld [vmem:[#allocation2 + $0x520] sm:$0xff]  ;;  %v792_v61 = vld [vmem:[#allocation2 + $0x508] sm:$0xff]  ;;  %v2635_v38 = vcombine.low %v784_v53, %v788_v54  ;;  %v653_v53 = vld [vmem:[#allocation2 + $0xb0] sm:$0xff] }
 0x2fe   :  { %v796_v62 = vld [vmem:[#allocation2 + $0x528] sm:$0xff]  ;;  %v777_v54 = vld [vmem:[#allocation2 + $0x490] sm:$0xff] }
 0x2ff   :  { %1937 = vmatprep.subr.bf16.mxu1 %v2604_v1  ;;  %v799_v1 = vld [vmem:[#allocation2 + $0x540] sm:$0xff] }
 0x300   :  { %1836 = vmatpush1.bf16.msra.mxu0 %v2521_v2  ;;  %v3199_v2 = vld.sshfl [vmem:[%s3323_s2] sm:$0x33 pattern:$0x76325410]  ;;  %1938 = vmatpush1.bf16.msra.mxu1 %v2603_v41  ;;  %v2644_v41 = vcombine.high %v792_v61, %v796_v62 }
 0x301   :  { %1837 = vmatprep.subr.bf16.mxu0 %v2530_v3  ;;  %v759_v3 = vld [vmem:[#allocation2 + $0x400] sm:$0xff]  ;;  %v3203_v5 = vpack.c.bf16 %v3199_v2, %v3199_v2 }
 0x302   :  { %v2609_v9 = vcombine.low %v759_v3, %v763_v4 }
 0x303   :  { %1857 = vmatprep.mubr.bf16.mxu0 %v3203_v5  ;;  %1939 = vmatprep.mubr.bf16.mxu1 %v3203_v5 }
 0x304   :  { %1838 = vmatpush1.bf16.msra.mxu0 %v2529_v6  ;;  %v2610_v6 = vcombine.high %v759_v3, %v763_v4  ;;  %v803_v3 = vld [vmem:[#allocation2 + $0x560] sm:$0xff]  ;;  %v800_v4 = vld [vmem:[#allocation2 + $0x548] sm:$0xff] }
 0x305   :  { %1839 = vmatprep.subr.bf16.mxu0 %v2538_v7  ;;  %v760_v7 = vld [vmem:[#allocation2 + $0x408] sm:$0xff] }
 0x308   :  { %1840 = vmatpush1.bf16.msra.mxu0 %v2537_v10  ;;  %v2611_v10 = vcombine.low %v760_v7, %v764_v8 }
 0x309   :  { %1841 = vmatprep.subr.bf16.mxu0 %v2546_v11  ;;  %v2612_v11 = vcombine.high %v760_v7, %v764_v8  ;;  %v2641_v7 = vcombine.low %v791_v59, %v795_v60  ;;  %v2643_v8 = vcombine.low %v792_v61, %v796_v62  ;;  %v661_v61 = vld [vmem:[#allocation2 + $0xf0] sm:$0xff] }
 0x30a   :  { %v785_v62 = vld [vmem:[#allocation2 + $0x4d0] sm:$0xff] }
 0x30b   :  { %1948 = vmatprep.subr.bf16.mxu1 %v2612_v11  ;;  %v807_v11 = vld [vmem:[#allocation2 + $0x580] sm:$0xff] }
 0x30c   :  { %1842 = vmatpush1.bf16.msra.mxu0 %v2545_v14 }
 0x30d   :  { %1843 = vmatprep.subr.bf16.mxu0 %v2554_v15 }
 0x310   :  { %1844 = vmatpush1.bf16.msra.mxu0 %v2553_v18 }
 0x311   :  { %1845 = vmatprep.subr.bf16.mxu0 %v2562_v19 }
 0x314   :  { %1846 = vmatpush1.bf16.msra.mxu0 %v2561_v20 }
 0x315   :  { %1847 = vmatprep.subr.bf16.mxu0 %v2570_v24 }
 0x318   :  { %1848 = vmatpush1.bf16.msra.mxu0 %v2569_v26 }
 0x319   :  { %1849 = vmatprep.subr.bf16.mxu0 %v2578_v37 }
 0x31c   :  { %1850 = vmatpush1.bf16.msra.mxu0 %v2577_v42  ;;  %v2618_v42 = vcombine.high %v767_v27, %v771_v32 }
 0x31d   :  { %1851 = vmatprep.subr.bf16.mxu0 %v2586_v47  ;;  %v2617_v47 = vcombine.low %v767_v27, %v771_v32  ;;  %v633_v27 = vld [vmem:[#allocation2 + $0x10] sm:$0xff] }
 0x31e   :  { %v637_v32 = vld [vmem:[#allocation2 + $0x30] sm:$0xff] }
 0x320   :  { %1852 = vmatpush1.bf16.msra.mxu0 %v2585_v49  ;;  %v2626_v49 = vcombine.high %v775_v44, %v779_v45 }
 0x321   :  { %1853 = vmatprep.subr.bf16.mxu0 %v2594_v55  ;;  %v2625_v55 = vcombine.low %v775_v44, %v779_v45  ;;  %v2614_v44 = vcombine.high %v761_v34, %v765_v35  ;;  %v641_v45 = vld [vmem:[#allocation2 + $0x50] sm:$0xff] }
 0x324   :  { %1854 = vmatpush1.bf16.msra.mxu0 %v2593_v57  ;;  %v2634_v57 = vcombine.high %v783_v51, %v787_v52 }
 0x325   :  { %1855 = vmatprep.subr.bf16.mxu0 %v2602_v63  ;;  %v2633_v63 = vcombine.low %v783_v51, %v787_v52  ;;  %v649_v52 = vld [vmem:[#allocation2 + $0x90] sm:$0xff] }
 0x328   :  { %1856 = vmatpush1.bf16.msra.mxu0 %v2601_v39  ;;  %v2642_v39 = vcombine.high %v791_v59, %v795_v60  ;;  %v657_v60 = vld [vmem:[#allocation2 + $0xd0] sm:$0xff] }
 0x329   :  { %1866 = vmatprep.subr.bf16.mxu0 %v2610_v6  ;;  %v804_v6 = vld [vmem:[#allocation2 + $0x568] sm:$0xff] }
 0x3be   :  { %v592_v13 = vpop.f32.mrb[8].mxu0 }
 0x3bf   :  { %v593_v14 = vadd.f32 %v2473_v12, %v592_v13  ;;  %v2787_v15 = vpop.f32.mrb[9].mxu0  ;;  %v811_v12 = vld [vmem:[#allocation2 + $0x5a0] sm:$0xff]  ;;  %v808_v13 = vld [vmem:[#allocation2 + $0x588] sm:$0xff] }
 0x3c0   :  { %v595_v16 = vpop.f32.mrb[10].mxu0  ;;  %v2649_v15 = vcombine.low %v799_v1, %v803_v3 }
 0x3c1   :  { %v598_v17 = vmin.f32 %v593_v14, 0.0  ;;  %v2788_v18 = vpop.f32.mrb[11].mxu0  ;;  %vm609_vm11 = vcmp.gt.f32.partialorder %v593_v14, 0.0  ;;  %v2651_v16 = vcombine.low %v800_v4, %v804_v6 }
 0x3c3   :  { %v599_v19 = vmul.f32 0.16666667, %v598_v17  ;;  %v605_v20 = vmul.f32 1.442695, %v598_v17  ;;  %vm604_vm10 = vcmp.gt.f32.partialorder %v598_v17, -0.01 }
 0x3c5   :  { %v600_v21 = vadd.f32 0.5, %v599_v19  ;;  %2882 = vpow2.f32 %v605_v20  ;;  %v815_v19 = vld [vmem:[#allocation2 + $0x5c0] sm:$0xff] }
 0x3c6   :  { %v819_v20 = vld [vmem:[#allocation2 + $0x5e0] sm:$0xff] }
 0x3c7   :  { %v601_v22 = vmul.f32 %v600_v21, %v598_v17  ;;  %v816_v21 = vld [vmem:[#allocation2 + $0x5c8] sm:$0xff] }
 0x3c9   :  { %v602_v23 = vadd.f32 1.0, %v601_v22  ;;  %v820_v22 = vld [vmem:[#allocation2 + $0x5e8] sm:$0xff] }
 0x3cb   :  { %v603_v25 = vmul.f32 %v602_v23, %v598_v17  ;;  %v2658_v17 = vcombine.high %v807_v11, %v811_v12  ;;  %v2657_v23 = vcombine.low %v807_v11, %v811_v12  ;;  %v673_v12 = vld [vmem:[#allocation2 + $0x150] sm:$0xff] }
 0x3cf   :  { %v2883_v24 = vpop.eup %2882 }
 0x3d0   :  { %v2479_v26 = vadd.f32 -1.0, %v2883_v24 }
 0x3d2   :  { %v608_v36 = vsel %vm604_vm10, %v603_v25, %v2479_v26  ;;  %v2666_v25 = vcombine.high %v815_v19, %v819_v20  ;;  %v2668_v26 = vcombine.high %v816_v21, %v820_v22 }
 0x3d3   :  { %v610_v37 = vsel %vm609_vm11, %v593_v14, %v608_v36  ;;  %v812_v14 = vld [vmem:[#allocation2 + $0x5a8] sm:$0xff]  ;;  %v3220_v36 = vcombine.high %v3199_v2, %v3199_v2  ;;  %v2485_v2 = vcombine.low %v633_v27, %v637_v32 }
 0x3d4   :  { %v3210_v40 = vpack.c.bf16 %v610_v37, %v610_v37  ;;  %v2660_v18 = vcombine.high %v808_v13, %v812_v14  ;;  %v2659_v24 = vcombine.low %v808_v13, %v812_v14  ;;  %v2665_v37 = vcombine.low %v815_v19, %v819_v20  ;;  %v677_v13 = vld [vmem:[#allocation2 + $0x170] sm:$0xff] }
 0x3d5   :  { %v801_v14 = vld [vmem:[#allocation2 + $0x550] sm:$0xff] }
 0x3d6   :  { %2673 = vmatmul.mubr.msk.bf16.vlgmr.msra.gmra.mrb[12].mxu0 %vm626_vm12, %v3210_v40  ;;  %2674 = vmatmul.mubr.msk.bf16.vlgmr.msra.gmra.mrb[4].mxu1 %vm626_vm12, %v3210_v40  ;;  %v681_v20 = vld [vmem:[#allocation2 + $0x190] sm:$0xff] }
 0x3d7   :  { %1867 = vmatpush1.bf16.msra.mxu0 %v2609_v9  ;;  %1949 = vmatpush1.bf16.msra.mxu1 %v2611_v10  ;;  %v2650_v9 = vcombine.high %v799_v1, %v803_v3  ;;  %v2652_v10 = vcombine.high %v800_v4, %v804_v6  ;;  %v665_v3 = vld [vmem:[#allocation2 + $0x110] sm:$0xff] }
 0x3d8   :  { %1868 = vmatprep.subr.bf16.mxu0 %v2618_v42  ;;  %1950 = vmatprep.subr.bf16.mxu1 %v2620_v43  ;;  %v2667_v42 = vcombine.low %v816_v21, %v820_v22  ;;  %v2486_v43 = vcombine.high %v633_v27, %v637_v32  ;;  %v669_v4 = vld [vmem:[#allocation2 + $0x130] sm:$0xff] }
 0x3d9   :  { %1898 = vmatprep.mubr.bf16.mxu0 %v2936_v0  ;;  %1980 = vmatprep.mubr.bf16.mxu1 %v2936_v0  ;;  %v793_v6 = vld [vmem:[#allocation2 + $0x510] sm:$0xff] }
 0x3da   :  { %v685_v21 = vld [vmem:[#allocation2 + $0x1b0] sm:$0xff] }
 0x3db   :  { %1869 = vmatpush1.bf16.msra.mxu0 %v2617_v47  ;;  %1951 = vmatpush1.bf16.msra.mxu1 %v2619_v48  ;;  %v773_v47 = vld [vmem:[#allocation2 + $0x470] sm:$0xff]  ;;  %v3224_v48 = vpack.c.bf16 %v3220_v36, %v3220_v36 }
 0x3dc   :  { %1870 = vmatprep.subr.bf16.mxu0 %v2626_v49  ;;  %1952 = vmatprep.subr.bf16.mxu1 %v2628_v50  ;;  %v2613_v49 = vcombine.low %v761_v34, %v765_v35  ;;  %v2494_v50 = vcombine.high %v641_v45, %v645_v28  ;;  %v2622_v51 = vcombine.high %v769_v46, %v773_v47  ;;  %v809_v22 = vld [vmem:[#allocation2 + $0x590] sm:$0xff] }
 0x3dd   :  { %v689_v32 = vld [vmem:[#allocation2 + $0x1d0] sm:$0xff] }
 0x3de   :  { %v693_v34 = vld [vmem:[#allocation2 + $0x1f0] sm:$0xff] }
 0x3df   :  { %1871 = vmatpush1.bf16.msra.mxu0 %v2625_v55  ;;  %1953 = vmatpush1.bf16.msra.mxu1 %v2627_v56  ;;  %v781_v55 = vld [vmem:[#allocation2 + $0x4b0] sm:$0xff]  ;;  %v2493_v56 = vcombine.low %v641_v45, %v645_v28 }
 0x3e0   :  { %1872 = vmatprep.subr.bf16.mxu0 %v2634_v57  ;;  %1954 = vmatprep.subr.bf16.mxu1 %v2636_v58  ;;  %v2621_v57 = vcombine.low %v769_v46, %v773_v47  ;;  %v2502_v58 = vcombine.high %v649_v52, %v653_v53  ;;  %v2630_v59 = vcombine.high %v777_v54, %v781_v55  ;;  %v817_v35 = vld [vmem:[#allocation2 + $0x5d0] sm:$0xff]  ;;  %v634_v47 = vld [vmem:[#allocation2 + $0x18] sm:$0xff] }
 0x3e1   :  { %v697_v28 = vld [vmem:[#allocation2 + $0x210] sm:$0xff] }
 0x3e2   :  { %v701_v46 = vld [vmem:[#allocation2 + $0x230] sm:$0xff] }
 0x3e3   :  { %1873 = vmatpush1.bf16.msra.mxu0 %v2633_v63  ;;  %1955 = vmatpush1.bf16.msra.mxu1 %v2635_v38  ;;  %v789_v63 = vld [vmem:[#allocation2 + $0x4f0] sm:$0xff]  ;;  %v2501_v38 = vcombine.low %v649_v52, %v653_v53 }
 0x3e4   :  { %1874 = vmatprep.subr.bf16.mxu0 %v2642_v39  ;;  %1956 = vmatprep.subr.bf16.mxu1 %v2644_v41  ;;  %v2629_v39 = vcombine.low %v777_v54, %v781_v55  ;;  %v2510_v41 = vcombine.high %v657_v60, %v661_v61  ;;  %v2638_v1 = vcombine.high %v785_v62, %v789_v63  ;;  %v705_v53 = vld [vmem:[#allocation2 + $0x250] sm:$0xff]  ;;  %v642_v55 = vld [vmem:[#allocation2 + $0x58] sm:$0xff] }
 0x3e5   :  { %v709_v54 = vld [vmem:[#allocation2 + $0x270] sm:$0xff] }
 0x3e7   :  { %1875 = vmatpush1.bf16.msra.mxu0 %v2641_v7  ;;  %1957 = vmatpush1.bf16.msra.mxu1 %v2643_v8  ;;  %v797_v7 = vld [vmem:[#allocation2 + $0x530] sm:$0xff]  ;;  %v2509_v8 = vcombine.low %v657_v60, %v661_v61 }
 0x3e8   :  { %1876 = vmatprep.subr.bf16.mxu0 %v2650_v9  ;;  %1958 = vmatprep.subr.bf16.mxu1 %v2652_v10  ;;  %v2637_v9 = vcombine.low %v785_v62, %v789_v63  ;;  %v2518_v10 = vcombine.high %v665_v3, %v669_v4  ;;  %v2646_v11 = vcombine.high %v793_v6, %v797_v7  ;;  %v713_v61 = vld [vmem:[#allocation2 + $0x290] sm:$0xff]  ;;  %v650_v63 = vld [vmem:[#allocation2 + $0x98] sm:$0xff] }
 0x3e9   :  { %v717_v62 = vld [vmem:[#allocation2 + $0x2b0] sm:$0xff] }
 0x3eb   :  { %1877 = vmatpush1.bf16.msra.mxu0 %v2649_v15  ;;  %1959 = vmatpush1.bf16.msra.mxu1 %v2651_v16  ;;  %v805_v15 = vld [vmem:[#allocation2 + $0x570] sm:$0xff]  ;;  %v2517_v16 = vcombine.low %v665_v3, %v669_v4 }
 0x3ec   :  { %1878 = vmatprep.subr.bf16.mxu0 %v2658_v17  ;;  %1960 = vmatprep.subr.bf16.mxu1 %v2660_v18  ;;  %v2645_v17 = vcombine.low %v793_v6, %v797_v7  ;;  %v2526_v18 = vcombine.high %v673_v12, %v677_v13  ;;  %v2654_v19 = vcombine.high %v801_v14, %v805_v15  ;;  %v721_v4 = vld [vmem:[#allocation2 + $0x2d0] sm:$0xff]  ;;  %v658_v7 = vld [vmem:[#allocation2 + $0xd8] sm:$0xff] }
 0x3ed   :  { %v725_v6 = vld [vmem:[#allocation2 + $0x2f0] sm:$0xff] }
 0x3ef   :  { %1879 = vmatpush1.bf16.msra.mxu0 %v2657_v23  ;;  %1961 = vmatpush1.bf16.msra.mxu1 %v2659_v24  ;;  %v813_v23 = vld [vmem:[#allocation2 + $0x5b0] sm:$0xff]  ;;  %v2525_v24 = vcombine.low %v673_v12, %v677_v13 }
 0x3f0   :  { %1880 = vmatprep.subr.bf16.mxu0 %v2666_v25  ;;  %1962 = vmatprep.subr.bf16.mxu1 %v2668_v26  ;;  %v2653_v25 = vcombine.low %v801_v14, %v805_v15  ;;  %v2534_v26 = vcombine.high %v681_v20, %v685_v21  ;;  %v2662_v27 = vcombine.high %v809_v22, %v813_v23  ;;  %v729_v13 = vld [vmem:[#allocation2 + $0x310] sm:$0xff]  ;;  %v666_v15 = vld [vmem:[#allocation2 + $0x118] sm:$0xff] }
 0x3f1   :  { %v733_v14 = vld [vmem:[#allocation2 + $0x330] sm:$0xff] }
 0x3f3   :  { %1881 = vmatpush1.bf16.msra.mxu0 %v2665_v37  ;;  %1963 = vmatpush1.bf16.msra.mxu1 %v2667_v42  ;;  %v821_v37 = vld [vmem:[#allocation2 + $0x5f0] sm:$0xff]  ;;  %v2533_v42 = vcombine.low %v681_v20, %v685_v21 }
 0x3f4   :  { %1989 = vmatprep.subr.bf16.mxu0 %v2486_v43  ;;  %2030 = vmatprep.subr.bf16.mxu1 %v2614_v44  ;;  %v2661_v43 = vcombine.low %v809_v22, %v813_v23  ;;  %v2542_v44 = vcombine.high %v689_v32, %v693_v34  ;;  %v2670_v45 = vcombine.high %v817_v35, %v821_v37  ;;  %v737_v20 = vld [vmem:[#allocation2 + $0x350] sm:$0xff]  ;;  %v674_v22 = vld [vmem:[#allocation2 + $0x158] sm:$0xff] }
 0x3f5   :  { %v741_v21 = vld [vmem:[#allocation2 + $0x370] sm:$0xff]  ;;  %v678_v23 = vld [vmem:[#allocation2 + $0x178] sm:$0xff] }
 0x3f6   :  { %1899 = vmatmul.mubr.bf16.vlgmr.msra.gmra.mrb[12].mxu0 %v3224_v48  ;;  %1981 = vmatmul.mubr.bf16.vlgmr.msra.gmra.mrb[4].mxu1 %v3224_v48 }
 0x3f7   :  { %1990 = vmatpush1.bf16.msra.mxu0 %v2485_v2  ;;  %2031 = vmatpush1.bf16.msra.mxu1 %v2613_v49  ;;  %v638_v2 = vld [vmem:[#allocation2 + $0x38] sm:$0xff]  ;;  %v2541_v49 = vcombine.low %v689_v32, %v693_v34  ;;  %v745_v32 = vld [vmem:[#allocation2 + $0x390] sm:$0xff] }
 0x3f8   :  { %1991 = vmatprep.subr.bf16.mxu0 %v2494_v50  ;;  %2032 = vmatprep.subr.bf16.mxu1 %v2622_v51  ;;  %v2669_v50 = vcombine.low %v817_v35, %v821_v37  ;;  %v2550_v51 = vcombine.high %v697_v28, %v701_v46  ;;  %v2488_v52 = vcombine.high %v634_v47, %v638_v2  ;;  %v749_v34 = vld [vmem:[#allocation2 + $0x3b0] sm:$0xff]  ;;  %v682_v35 = vld [vmem:[#allocation2 + $0x198] sm:$0xff] }
 0x3f9   :  { %2062 = vmatprep.mubr.bf16.mxu1 %v2936_v0  ;;  %2021 = vmatprep.mubr.bf16.mxu0 %v3203_v5  ;;  %v686_v37 = vld [vmem:[#allocation2 + $0x1b8] sm:$0xff] }
 0x3fb   :  { %1992 = vmatpush1.bf16.msra.mxu0 %v2493_v56  ;;  %2033 = vmatpush1.bf16.msra.mxu1 %v2621_v57  ;;  %v646_v56 = vld [vmem:[#allocation2 + $0x78] sm:$0xff]  ;;  %v2549_v57 = vcombine.low %v697_v28, %v701_v46  ;;  %v753_v28 = vld [vmem:[#allocation2 + $0x3d0] sm:$0xff] }
 0x3fc   :  { %1993 = vmatprep.subr.bf16.mxu0 %v2502_v58  ;;  %2034 = vmatprep.subr.bf16.mxu1 %v2630_v59  ;;  %v2487_v58 = vcombine.low %v634_v47, %v638_v2  ;;  %v2558_v59 = vcombine.high %v705_v53, %v709_v54  ;;  %v2496_v60 = vcombine.high %v642_v55, %v646_v56  ;;  %v757_v46 = vld [vmem:[#allocation2 + $0x3f0] sm:$0xff]  ;;  %v690_v47 = vld [vmem:[#allocation2 + $0x1d8] sm:$0xff] }
 0x3fd   :  { %v694_v2 = vld [vmem:[#allocation2 + $0x1f8] sm:$0xff] }
 0x3ff   :  { %1994 = vmatpush1.bf16.msra.mxu0 %v2501_v38  ;;  %2035 = vmatpush1.bf16.msra.mxu1 %v2629_v39  ;;  %v654_v38 = vld [vmem:[#allocation2 + $0xb8] sm:$0xff]  ;;  %v2557_v39 = vcombine.low %v705_v53, %v709_v54 }
 0x400   :  { %1995 = vmatprep.subr.bf16.mxu0 %v2510_v41  ;;  %2036 = vmatprep.subr.bf16.mxu1 %v2638_v1  ;;  %v2495_v41 = vcombine.low %v642_v55, %v646_v56  ;;  %v2566_v1 = vcombine.high %v713_v61, %v717_v62  ;;  %v2504_v3 = vcombine.high %v650_v63, %v654_v38  ;;  %v698_v53 = vld [vmem:[#allocation2 + $0x218] sm:$0xff] }
 0x401   :  { %v702_v54 = vld [vmem:[#allocation2 + $0x238] sm:$0xff]  ;;  %v2605_v55 = vcombine.low %v753_v28, %v757_v46  ;;  %v2543_v56 = vcombine.low %v690_v47, %v694_v2 }
 0x403   :  { %1996 = vmatpush1.bf16.msra.mxu0 %v2509_v8  ;;  %2037 = vmatpush1.bf16.msra.mxu1 %v2637_v9  ;;  %v662_v8 = vld [vmem:[#allocation2 + $0xf8] sm:$0xff]  ;;  %v2565_v9 = vcombine.low %v713_v61, %v717_v62 }
 0x404   :  { %1997 = vmatprep.subr.bf16.mxu0 %v2518_v10  ;;  %2038 = vmatprep.subr.bf16.mxu1 %v2646_v11  ;;  %v2503_v10 = vcombine.low %v650_v63, %v654_v38  ;;  %v2574_v11 = vcombine.high %v721_v4, %v725_v6  ;;  %v2512_v12 = vcombine.high %v658_v7, %v662_v8  ;;  %v714_v62 = vld [vmem:[#allocation2 + $0x298] sm:$0xff] }
 0x405   :  { %v718_v63 = vld [vmem:[#allocation2 + $0x2b8] sm:$0xff] }
 0x407   :  { %1998 = vmatpush1.bf16.msra.mxu0 %v2517_v16  ;;  %2039 = vmatpush1.bf16.msra.mxu1 %v2645_v17  ;;  %v670_v16 = vld [vmem:[#allocation2 + $0x138] sm:$0xff]  ;;  %v2573_v17 = vcombine.low %v721_v4, %v725_v6 }
 0x408   :  { %1999 = vmatprep.subr.bf16.mxu0 %v2526_v18  ;;  %2040 = vmatprep.subr.bf16.mxu1 %v2654_v19  ;;  %v2511_v18 = vcombine.low %v658_v7, %v662_v8  ;;  %v2582_v19 = vcombine.high %v729_v13, %v733_v14  ;;  %v730_v6 = vld [vmem:[#allocation2 + $0x318] sm:$0xff] }
 0x409   :  { %v734_v7 = vld [vmem:[#allocation2 + $0x338] sm:$0xff] }
 0x40b   :  { %2000 = vmatpush1.bf16.msra.mxu0 %v2525_v24  ;;  %2041 = vmatpush1.bf16.msra.mxu1 %v2653_v25  ;;  %v2581_v24 = vcombine.low %v729_v13, %v733_v14  ;;  %v2519_v25 = vcombine.low %v666_v15, %v670_v16  ;;  %v746_v14 = vld [vmem:[#allocation2 + $0x398] sm:$0xff] }
 0x40c   :  { %2001 = vmatprep.subr.bf16.mxu0 %v2534_v26  ;;  %2042 = vmatprep.subr.bf16.mxu1 %v2662_v27  ;;  %v2590_v26 = vcombine.high %v737_v20, %v741_v21  ;;  %v2528_v27 = vcombine.high %v674_v22, %v678_v23 }
 0x40f   :  { %2002 = vmatpush1.bf16.msra.mxu0 %v2533_v42  ;;  %2043 = vmatpush1.bf16.msra.mxu1 %v2661_v43  ;;  %v2589_v42 = vcombine.low %v737_v20, %v741_v21  ;;  %v2527_v43 = vcombine.low %v674_v22, %v678_v23  ;;  %v762_v21 = vld [vmem:[#allocation2 + $0x418] sm:$0xff] }
 0x410   :  { %2003 = vmatprep.subr.bf16.mxu0 %v2542_v44  ;;  %2044 = vmatprep.subr.bf16.mxu1 %v2670_v45  ;;  %v2598_v44 = vcombine.high %v745_v32, %v749_v34  ;;  %v2536_v45 = vcombine.high %v682_v35, %v686_v37  ;;  %v766_v22 = vld [vmem:[#allocation2 + $0x438] sm:$0xff] }
 0x413   :  { %2004 = vmatpush1.bf16.msra.mxu0 %v2541_v49  ;;  %2045 = vmatpush1.bf16.msra.mxu1 %v2669_v50  ;;  %v2597_v49 = vcombine.low %v745_v32, %v749_v34  ;;  %v2535_v50 = vcombine.low %v682_v35, %v686_v37  ;;  %v778_v34 = vld [vmem:[#allocation2 + $0x498] sm:$0xff] }
 0x414   :  { %2005 = vmatprep.subr.bf16.mxu0 %v2550_v51  ;;  %2071 = vmatprep.subr.bf16.mxu1 %v2488_v52  ;;  %v2606_v51 = vcombine.high %v753_v28, %v757_v46  ;;  %v2544_v52 = vcombine.high %v690_v47, %v694_v2  ;;  %v782_v35 = vld [vmem:[#allocation2 + $0x4b8] sm:$0xff] }
 0x415   :  { %v794_v46 = vld [vmem:[#allocation2 + $0x518] sm:$0xff] }
 0x416   :  { %2063 = vmatmul.mubr.bf16.vlgmr.msra.gmra.mrb[8].mxu1 %v3224_v48  ;;  %v798_v47 = vld [vmem:[#allocation2 + $0x538] sm:$0xff] }
 0x417   :  { %2006 = vmatpush1.bf16.msra.mxu0 %v2549_v57  ;;  %2072 = vmatpush1.bf16.msra.mxu1 %v2487_v58  ;;  %v2552_v57 = vcombine.high %v698_v53, %v702_v54  ;;  %v706_v58 = vld [vmem:[#allocation2 + $0x258] sm:$0xff] }
 0x418   :  { %2007 = vmatprep.subr.bf16.mxu0 %v2558_v59  ;;  %2073 = vmatprep.subr.bf16.mxu1 %v2496_v60  ;;  %v710_v59 = vld [vmem:[#allocation2 + $0x278] sm:$0xff]  ;;  %v2551_v60 = vcombine.low %v698_v53, %v702_v54 }
 0x419   :  { %2103 = vmatprep.mubr.bf16.mxu1 %v3203_v5  ;;  %v2520_v5 = vcombine.high %v666_v15, %v670_v16  ;;  %v2560_v61 = vcombine.high %v706_v58, %v710_v59  ;;  %v2559_v38 = vcombine.low %v706_v58, %v710_v59  ;;  %v750_v15 = vld [vmem:[#allocation2 + $0x3b8] sm:$0xff] }
 0x41a   :  { %v814_v53 = vld [vmem:[#allocation2 + $0x5b8] sm:$0xff] }
 0x41b   :  { %2008 = vmatpush1.bf16.msra.mxu0 %v2557_v39  ;;  %2074 = vmatpush1.bf16.msra.mxu1 %v2495_v41  ;;  %v2568_v39 = vcombine.high %v714_v62, %v718_v63  ;;  %v722_v41 = vld [vmem:[#allocation2 + $0x2d8] sm:$0xff] }
 0x41c   :  { %2009 = vmatprep.subr.bf16.mxu0 %v2566_v1  ;;  %2075 = vmatprep.subr.bf16.mxu1 %v2504_v3  ;;  %v726_v1 = vld [vmem:[#allocation2 + $0x2f8] sm:$0xff]  ;;  %v2567_v3 = vcombine.low %v714_v62, %v718_v63  ;;  %v2859_v62 = vld [vmem:[%s3334_s13] sm:$0xff]   ;;  %v2860_v63 = vld [vmem:[%s3334_s13 + $0x48] sm:$0xff]  }
 0x41d   :  { %v2576_v4 = vcombine.high %v722_v41, %v726_v1  ;;  %v2575_v8 = vcombine.low %v722_v41, %v726_v1 }
 0x41f   :  { %2010 = vmatpush1.bf16.msra.mxu0 %v2565_v9  ;;  %2076 = vmatpush1.bf16.msra.mxu1 %v2503_v10  ;;  %v2584_v9 = vcombine.high %v730_v6, %v734_v7  ;;  %v738_v10 = vld [vmem:[#allocation2 + $0x358] sm:$0xff] }
 0x420   :  { %2011 = vmatprep.subr.bf16.mxu0 %v2574_v11  ;;  %2077 = vmatprep.subr.bf16.mxu1 %v2512_v12  ;;  %v742_v11 = vld [vmem:[#allocation2 + $0x378] sm:$0xff]  ;;  %v2583_v12 = vcombine.low %v730_v6, %v734_v7  ;;  %v2862_v6 = vld [vmem:[%s3334_s13 + $0x50] sm:$0xff]  }
 0x421   :  { %v2592_v13 = vcombine.high %v738_v10, %v742_v11  ;;  %v2591_v16 = vcombine.low %v738_v10, %v742_v11  ;;  %v2864_v10 = vld [vmem:[%s3334_s13 + $0x58] sm:$0xff]  }
 0x422   :  { %v2865_v11 = vld [vmem:[%s3334_s13 + $0x18] sm:$0xff]  }
 0x423   :  { %2012 = vmatpush1.bf16.msra.mxu0 %v2573_v17  ;;  %2078 = vmatpush1.bf16.msra.mxu1 %v2511_v18  ;;  %v2600_v17 = vcombine.high %v746_v14, %v750_v15  ;;  %v754_v18 = vld [vmem:[#allocation2 + $0x3d8] sm:$0xff] }
 0x424   :  { %2013 = vmatprep.subr.bf16.mxu0 %v2582_v19  ;;  %2079 = vmatprep.subr.bf16.mxu1 %v2520_v5  ;;  %v758_v19 = vld [vmem:[#allocation2 + $0x3f8] sm:$0xff]  ;;  %v2599_v5 = vcombine.low %v746_v14, %v750_v15  ;;  %v2868_v14 = vld [vmem:[%s3334_s13 + $0x68] sm:$0xff]  }
 0x425   :  { %v2608_v20 = vcombine.high %v754_v18, %v758_v19  ;;  %v2607_v23 = vcombine.low %v754_v18, %v758_v19  ;;  %v2869_v15 = vld [vmem:[%s3334_s13 + $0x28] sm:$0xff]   ;;  %v2872_v18 = vld [vmem:[%s3334_s13 + $0x78] sm:$0xff]  }
 0x426   :  { %v2873_v19 = vld [vmem:[%s3334_s13 + $0x38] sm:$0xff]  }
 0x427   :  { %2014 = vmatpush1.bf16.msra.mxu0 %v2581_v24  ;;  %2080 = vmatpush1.bf16.msra.mxu1 %v2519_v25  ;;  %v2616_v24 = vcombine.high %v762_v21, %v766_v22  ;;  %v770_v25 = vld [vmem:[#allocation2 + $0x458] sm:$0xff] }
 0x428   :  { %2015 = vmatprep.subr.bf16.mxu0 %v2590_v26  ;;  %2081 = vmatprep.subr.bf16.mxu1 %v2528_v27  ;;  %v774_v26 = vld [vmem:[#allocation2 + $0x478] sm:$0xff]  ;;  %v2615_v27 = vcombine.low %v762_v21, %v766_v22 }
 0x429   :  { %v2624_v32 = vcombine.high %v770_v25, %v774_v26  ;;  %v2623_v37 = vcombine.low %v770_v25, %v774_v26  ;;  %v823_v25 = vld [vmem:[%s3333_s12] sm:$0xff] }
 0x42b   :  { %2016 = vmatpush1.bf16.msra.mxu0 %v2589_v42  ;;  %2082 = vmatpush1.bf16.msra.mxu1 %v2527_v43  ;;  %v2632_v42 = vcombine.high %v778_v34, %v782_v35  ;;  %v786_v43 = vld [vmem:[#allocation2 + $0x4d8] sm:$0xff] }
 0x42c   :  { %2017 = vmatprep.subr.bf16.mxu0 %v2598_v44  ;;  %2083 = vmatprep.subr.bf16.mxu1 %v2536_v45  ;;  %v790_v44 = vld [vmem:[#allocation2 + $0x4f8] sm:$0xff]  ;;  %v2631_v45 = vcombine.low %v778_v34, %v782_v35 }
 0x42d   :  { %v2640_v28 = vcombine.high %v786_v43, %v790_v44  ;;  %v2639_v2 = vcombine.low %v786_v43, %v790_v44 }
 0x42f   :  { %2018 = vmatpush1.bf16.msra.mxu0 %v2597_v49  ;;  %2084 = vmatpush1.bf16.msra.mxu1 %v2535_v50  ;;  %v2648_v49 = vcombine.high %v794_v46, %v798_v47  ;;  %v802_v50 = vld [vmem:[#allocation2 + $0x558] sm:$0xff] }
 0x430   :  { %2019 = vmatprep.subr.bf16.mxu0 %v2606_v51  ;;  %2085 = vmatprep.subr.bf16.mxu1 %v2544_v52  ;;  %v2647_v51 = vcombine.low %v794_v46, %v798_v47  ;;  %v810_v52 = vld [vmem:[#allocation2 + $0x598] sm:$0xff]  ;;  %v832_v46 = vrot.slane %v823_v25, %v85_v33 }
 0x431   :  { %v2663_v58 = vcombine.low %v810_v52, %v814_v53 }
 0x433   :  { %2020 = vmatpush1.bf16.msra.mxu0 %v2605_v55  ;;  %2086 = vmatpush1.bf16.msra.mxu1 %v2543_v56  ;;  %v2664_v55 = vcombine.high %v810_v52, %v814_v53  ;;  %v818_v56 = vld [vmem:[#allocation2 + $0x5d8] sm:$0xff] }
 0x434   :  { %2087 = vmatprep.subr.bf16.mxu1 %v2552_v57  ;;  %v822_v57 = vld [vmem:[#allocation2 + $0x5f8] sm:$0xff] }
 0x435   :  { %v2672_v59 = vcombine.high %v818_v56, %v822_v57 }
 0x436   :  { %2675 = vmatmul.mubr.msk.bf16.vlgmr.msra.gmra.mrb[16].mxu0 %vm626_vm12, %v3210_v40 }
 0x437   :  { %2088 = vmatpush1.bf16.msra.mxu1 %v2551_v60  ;;  %v2671_v60 = vcombine.low %v818_v56, %v822_v57 }
 0x438   :  { %2089 = vmatprep.subr.bf16.mxu1 %v2560_v61  ;;  %v2858_v61 = vld [vmem:[%s3334_s13 + $0x40] sm:$0xff]  }
 0x439   :  { %2735 = vmatprep.subr.bf16.mxu0 %v2858_v61 }
 0x43a   :  { %2736 = vmatpush3.bf16.msra.mxu0 %v2859_v62 }
 0x43b   :  { %2090 = vmatpush1.bf16.msra.mxu1 %v2559_v38  ;;  %v2861_v38 = vld [vmem:[%s3334_s13 + $0x8] sm:$0xff]   ;;  %2737 = vmatprep.subr.bf16.mxu0 %v2860_v63 }
 0x43c   :  { %2091 = vmatprep.subr.bf16.mxu1 %v2568_v39 }
 0x43e   :  { %2738 = vmatpush3.bf16.msra.mxu0 %v2861_v38 }
 0x43f   :  { %2092 = vmatpush1.bf16.msra.mxu1 %v2567_v3  ;;  %2739 = vmatprep.subr.bf16.mxu0 %v2862_v6 }
 0x440   :  { %2093 = vmatprep.subr.bf16.mxu1 %v2576_v4 }
 0x443   :  { %2094 = vmatpush1.bf16.msra.mxu1 %v2575_v8 }
 0x444   :  { %2095 = vmatprep.subr.bf16.mxu1 %v2584_v9  ;;  %v2863_v9 = vld [vmem:[%s3334_s13 + $0x10] sm:$0xff]  }
 0x445   :  { %2740 = vmatpush3.bf16.msra.mxu0 %v2863_v9 }
 0x446   :  { %2741 = vmatprep.subr.bf16.mxu0 %v2864_v10 }
 0x447   :  { %2096 = vmatpush1.bf16.msra.mxu1 %v2583_v12  ;;  %v2866_v12 = vld [vmem:[%s3334_s13 + $0x60] sm:$0xff]  }
 0x448   :  { %2097 = vmatprep.subr.bf16.mxu1 %v2592_v13  ;;  %v2867_v13 = vld [vmem:[%s3334_s13 + $0x20] sm:$0xff]  }
 0x449   :  { %2742 = vmatpush3.bf16.msra.mxu0 %v2865_v11 }
 0x44a   :  { %2743 = vmatprep.subr.bf16.mxu0 %v2866_v12 }
 0x44b   :  { %2098 = vmatpush1.bf16.msra.mxu1 %v2591_v16  ;;  %v2870_v16 = vld [vmem:[%s3334_s13 + $0x70] sm:$0xff]  }
 0x44c   :  { %2099 = vmatprep.subr.bf16.mxu1 %v2600_v17  ;;  %v2871_v17 = vld [vmem:[%s3334_s13 + $0x30] sm:$0xff]  }
 0x44d   :  { %2744 = vmatpush3.bf16.msra.mxu0 %v2867_v13 }
 0x44e   :  { %2745 = vmatprep.subr.bf16.mxu0 %v2868_v14 }
 0x44f   :  { %2100 = vmatpush1.bf16.msra.mxu1 %v2599_v5 }
 0x450   :  { %2101 = vmatprep.subr.bf16.mxu1 %v2608_v20 }
 0x451   :  { %2746 = vmatpush3.bf16.msra.mxu0 %v2869_v15 }
 0x452   :  { %2747 = vmatprep.subr.bf16.mxu0 %v2870_v16 }
 0x453   :  { %2102 = vmatpush1.bf16.msra.mxu1 %v2607_v23  ;;  %v843_v23 = vsub.s32 4, %v3120_v30 }
 0x454   :  { %2112 = vmatprep.subr.bf16.mxu1 %v2616_v24  ;;  %v847_v24 = vsub.s32 5, %v3120_v30 }
 0x455   :  { %2748 = vmatpush3.bf16.msra.mxu0 %v2871_v17  ;;  %v844_v26 = vrot.slane %v823_v25, %v843_v23 }
 0x456   :  { %2676 = vmatmul.mubr.msk.bf16.vlgmr.msra.gmra.mrb[12].mxu1 %vm626_vm12, %v3210_v40  ;;  %v806_v40 = vld [vmem:[#allocation2 + $0x578] sm:$0xff]  ;;  %2749 = vmatprep.subr.bf16.mxu0 %v2872_v18 }
 0x457   :  { %2113 = vmatpush1.bf16.msra.mxu1 %v2615_v27  ;;  %2144 = vmatprep.mubr.bf16.mxu1 %v2936_v0  ;;  %v2656_v0 = vcombine.high %v802_v50, %v806_v40  ;;  %v2655_v54 = vcombine.low %v802_v50, %v806_v40  ;;  %v848_v27 = vrot.slane %v823_v25, %v847_v24  ;;  %v839_v40 = vsub.s32 3, %v3120_v30 }
 0x458   :  { %2114 = vmatprep.subr.bf16.mxu1 %v2624_v32 }
 0x459   :  { %2750 = vmatpush3.bf16.msra.mxu0 %v2873_v19  ;;  %v840_v52 = vrot.slane %v823_v25, %v839_v40 }
 0x45b   :  { %2115 = vmatpush1.bf16.msra.mxu1 %v2623_v37 }
 0x45c   :  { %2116 = vmatprep.subr.bf16.mxu1 %v2632_v42 }
 0x45f   :  { %2117 = vmatpush1.bf16.msra.mxu1 %v2631_v45 }
 0x460   :  { %2118 = vmatprep.subr.bf16.mxu1 %v2640_v28  ;;  %v828_v28 = vrot.slane %v823_v25, %v81_v31 }
 0x463   :  { %2119 = vmatpush1.bf16.msra.mxu1 %v2639_v2 }
 0x464   :  { %2120 = vmatprep.subr.bf16.mxu1 %v2648_v49  ;;  %v835_v49 = vsub.s32 2, %v3120_v30 }
 0x467   :  { %2121 = vmatpush1.bf16.msra.mxu1 %v2647_v51 }
 0x468   :  { %2122 = vmatprep.subr.bf16.mxu1 %v2656_v0  ;;  %v836_v0 = vrot.slane %v823_v25, %v835_v49 }
 0x46b   :  { %2123 = vmatpush1.bf16.msra.mxu1 %v2655_v54 }
 0x46c   :  { %2124 = vmatprep.subr.bf16.mxu1 %v2664_v55 }
 0x46f   :  { %2125 = vmatpush1.bf16.msra.mxu1 %v2663_v58 }
 0x470   :  { %2126 = vmatprep.subr.bf16.mxu1 %v2672_v59  ;;  %v851_v59 = vsub.s32 6, %v3120_v30 }
 0x472   :  { %v852_v63 = vrot.slane %v823_v25, %v851_v59 }
 0x473   :  { %2127 = vmatpush1.bf16.msra.mxu1 %v2671_v60  ;;  %v855_v60 = vsub.s32 7, %v3120_v30 }
 0x475   :  { %v856_v38 = vrot.slane %v823_v25, %v855_v60 }
 0x476   :  { %2145 = vmatmul.mubr.bf16.vlgmr.msra.gmra.mrb[12].mxu1 %v3224_v48 }
 0x4c9   :  { %v1900_v48 = vpop.f32.mrb[12].mxu0  ;;  %v1982_v39 = vpop.f32.mrb[4].mxu1 }
 0x4ca   :  { %v1902_v41 = vpop.f32.mrb[13].mxu0  ;;  %v1984_v1 = vpop.f32.mrb[5].mxu1  ;;  %v2789_v47 = vadd.f32 %v1900_v48, %v828_v28  ;;  %v2791_v53 = vadd.f32 %v1982_v39, %v836_v0  ;;  %v2394_v0 = vld [vmem:[%s3322_s1] sm:$0x3] }
 0x4cb   :  { %v1904_v3 = vpop.f32.mrb[14].mxu0  ;;  %v1986_v4 = vpop.f32.mrb[6].mxu1  ;;  %v2790_v2 = vadd.f32 %v1902_v41, %v832_v46  ;;  %v2792_v54 = vadd.f32 %v1984_v1, %v840_v52 }
 0x4cc   :  { %v1905_v7 = vpop.f32.mrb[15].mxu0  ;;  %v1987_v8 = vpop.f32.mrb[7].mxu1  ;;  %v2677_v50 = vmul.f32 -1.442695, %v2789_v47  ;;  %v2679_v55 = vmul.f32 -1.442695, %v2791_v53 }
 0x4cd   :  { %v2678_v51 = vmul.f32 -1.442695, %v2790_v2  ;;  %v2680_v56 = vmul.f32 -1.442695, %v2792_v54 }
 0x4ce   :  { %2884 = vpow2.f32 %v2677_v50 }
 0x4cf   :  { %2886 = vpow2.f32 %v2678_v51 }
 0x4d0   :  { %2888 = vpow2.f32 %v2679_v55  ;;  %v2939_v55 = vmov 3  }
 0x4d1   :  { %2890 = vpow2.f32 %v2680_v56  ;;  %2816 = vset.pattern.permute.xlu1 %v2939_v55  ;;  %2817 = vset.pattern.permute.xlu0 %v2939_v55  ;;  %v2397_v56 = vand.u32 127, %v79_v29 }
 0x4d3   :  { %vm2415_vm0 = vcmp.eq.s32.totalorder %v2397_v56, 2  ;;  %vm2414_vm1 = vcmp.eq.s32.totalorder %v2397_v56, 1  ;;  %vm2413_vm2 = vcmp.eq.s32.totalorder %v2397_v56, 0 }
 0x4d8   :  { %v2885_v31 = vpop.eup %2884 }
 0x4d9   :  { %v2887_v57 = vpop.eup %2886  ;;  %v2165_v33 = vadd.f32 1.0, %v2885_v31  ;;  %v2402_v31 = vcvt.s32.f32 %v2397_v56 }
 0x4da   :  { %v2166_v58 = vadd.f32 1.0, %v2887_v57  ;;  %v2889_v61 = vpop.eup %2888 }
 0x4db   :  { %2892 = vrcp.f32 %v2165_v33  ;;  %v2891_v62 = vpop.eup %2890  ;;  %v2167_v48 = vadd.f32 1.0, %v2889_v61 }
 0x4dc   :  { %2894 = vrcp.f32 %v2166_v58  ;;  %v2168_v39 = vadd.f32 1.0, %v2891_v62 }
 0x4dd   :  { %2896 = vrcp.f32 %v2167_v48 }
 0x4de   :  { %2898 = vrcp.f32 %v2168_v39 }
 0x4e5   :  { %v2893_v4 = vpop.eup %2892 }
 0x4e6   :  { %v2895_v8 = vpop.eup %2894 }
 0x4e7   :  { %v2897_v13 = vpop.eup %2896 }
 0x4e8   :  { %v2899_v14 = vpop.eup %2898  ;;  %v2183_v15 = vsub.f32 1.0, %v2897_v13 }
 0x4e9   :  { %v2064_v5 = vpop.f32.mrb[8].mxu1  ;;  %v2184_v17 = vsub.f32 1.0, %v2899_v14 }
 0x4ea   :  { %v2066_v20 = vpop.f32.mrb[9].mxu1 }
 0x4eb   :  { %v2068_v21 = vpop.f32.mrb[10].mxu1 }
 0x4ec   :  { %v2069_v22 = vpop.f32.mrb[11].mxu1 }
 0x4ed   :  { %v2188_v22 = vmul.f32 %v2899_v14, %v3220_v36 }
 0x509   :  { %v2023_v32 = vpop.f32.mrb[16].mxu0 }
 0x50a   :  { %v2024_v34 = vadd.f32 %v2023_v32, %v844_v26  ;;  %v2025_v35 = vpop.f32.mrb[17].mxu0 }
 0x50b   :  { %v2026_v37 = vadd.f32 %v2025_v35, %v848_v27  ;;  %v2027_v42 = vpop.f32.mrb[18].mxu0 }
 0x50c   :  { %v2065_v43 = vadd.f32 %v2064_v5, %v2024_v34  ;;  %v2028_v44 = vpop.f32.mrb[19].mxu0  ;;  %v2908_v5 = vld.sshfl [vmem:[%s3323_s2] sm:$0x33 pattern:$0x76325410] }
 0x50d   :  { %v2067_v45 = vadd.f32 %v2066_v20, %v2026_v37  ;;  %v2187_v20 = vmul.f32 %v2908_v5, %v2897_v13  ;;  %v2682_v34 = vld [vmem:[%s3335_s14] ss:$0 sm:$0xff] }
 0x549   :  { %v2146_v41 = vpop.f32.mrb[12].mxu1 }
 0x54a   :  { %v2793_v1 = vadd.f32 %v2146_v41, %v852_v63  ;;  %v2148_v3 = vpop.f32.mrb[13].mxu1 }
 0x54b   :  { %v2794_v6 = vadd.f32 %v2148_v3, %v856_v38  ;;  %v2150_v7 = vpop.f32.mrb[14].mxu1 }
 0x54c   :  { %v2177_v9 = vmul.f32 %v2893_v4, %v2793_v1  ;;  %v2151_v10 = vpop.f32.mrb[15].mxu1 }
 0x54d   :  { %v2178_v11 = vmul.f32 %v2895_v8, %v2794_v6 }
 0x54e   :  { %v2179_v12 = vadd.f32 %v2177_v9, %v2065_v43 }
 0x54f   :  { %v2180_v30 = vadd.f32 %v2178_v11, %v2067_v45 }
 0x550   :  { %2900 = vtanh.f32 %v2179_v12 }
 0x551   :  { %2902 = vtanh.f32 %v2180_v30 }
 0x55a   :  { %v2901_v16 = vpop.eup %2900 }
 0x55b   :  { %v2903_v18 = vpop.eup %2902  ;;  %v2185_v19 = vmul.f32 %v2901_v16, %v2183_v15 }
 0x55c   :  { %v2186_v21 = vmul.f32 %v2903_v18, %v2184_v17 }
 0x55d   :  { %v2189_v23 = vadd.f32 %v2187_v20, %v2185_v19 }
 0x55e   :  { %v2190_v24 = vadd.f32 %v2188_v22, %v2186_v21 }
 0x55f   :  { %v2203_v27 = vpack.c.bf16 %v2189_v23, %v2189_v23 }
 0x560   :  { %v2193_v25 = vcombine.low %v2189_v23, %v2190_v24  ;;  %v2204_v26 = vpack.c.bf16 %v2190_v24, %v2190_v24 }
 0x562   :  { %2681 = vst.sshfl [vmem:[%s3336_s15] sm:$0x33 pattern:$0x76325410] %v2193_v25  ;;  %2372 = vmatprep.mubr.bf16.mxu0 %v2204_v26 }
 0x563   :  { %2373 = vmatmul.mubr.bf16.vlgmr.msra.gmra.mrb[20].mxu0 %v2203_v27 }
 0x636   :  { %v2751_v32 = vpop.f32.mrb[20].mxu0 }
 0x637   :  { %v2752_v35 = vpop.f32.mrb[21].mxu0 }
 0x638   :  { %v2753_v37 = vadd.f32 %v2752_v35, %v2751_v32  ;;  %v2754_v42 = vpop.f32.mrb[22].mxu0 }
 0x639   :  { %v2755_v36 = vpop.f32.mrb[23].mxu0 }
 0x63a   :  { %v2375_v43 = vadd.f32 %v2753_v37, %v2682_v34 }
 0x63c   :  { %v2381_v44 = vsel %vm2380_vm13, %v2375_v43, -inf }
 0x63d   :  { %2382 = vmax.xlane.f32.xlu0 %v2381_v44 }
 0x6ca   :  { %v2383_v45 = vpop.xlane.xlu0 %2382 }
 0x6cb   :  { %v2384_v28 = vsub.f32 %v2375_v43, %v2383_v45 }
 0x6cd   :  { %v2385_v46 = vmul.f32 1.442695, %v2384_v28 }
 0x6cf   :  { %2904 = vpow2.f32 %v2385_v46 }
 0x6d9   :  { %v2905_v47 = vpop.eup %2904 }
 0x6da   :  { %v2387_v2 = vsel %vm2380_vm13, %v2905_v47, 0.0 }
 0x6db   :  { %2388 = vadd.xlane.f32.xlu0 %v2387_v2 }
 0x768   :  { %v2389_v49 = vpop.xlane.xlu0 %2388 }
 0x769   :  { %2906 = vlog2.f32 %v2389_v49 }
 0x773   :  { %v2907_v50 = vpop.eup %2906 }
 0x774   :  { %v2391_v40 = vmul.f32 0.6931472, %v2907_v50 }
 0x776   :  { %v2392_v51 = vadd.f32 %v2391_v40, %v2383_v45 }
 0x778   :  { %v2393_v52 = vsub.f32 %v2375_v43, %v2392_v51 }
 0x77a   :  { %v2395_v53 = vadd.f32 %v2394_v0, %v2393_v52 }
 0x77c   :  { %v2398_v54 = vsel %vm2380_vm13, %v2395_v53, -inf }
 0x77d   :  { %2399 = vmax.xlane.f32.xlu1 %v2398_v54 }
 0x80a   :  { %v2400_v57 = vpop.xlane.xlu1 %2399 }
 0x80b   :  { %vm2401_vm14 = vcmp.ge.f32.partialorder %v2395_v53, %v2400_v57 }
 0x80c   :  { %v2403_v33 = vsel %vm2401_vm14, %v2402_v31, 1e+09 }
 0x80d   :  { %v2404_v58 = vsel %vm2380_vm13, %v2403_v33, inf }
 0x80e   :  { %2405 = vmin.xlane.f32.xlu1 %v2404_v58 }
 0x81f   :  { %2420 = vperm.xlu1 %2816, %v2375_v43  }
 0x89b   :  { %v2406_v59 = vpop.xlane.xlu1 %2405 }
 0x89c   :  { %v2807_v60 = vtrunc.f32 %v2406_v59  ;;  %v2416_v29 = vsel %vm2415_vm0, %v2406_v59, 0.0 }
 0x89e   :  { %v2808_v61 = vcvt.f32.s32 %v2807_v60 }
 0x89f   :  { %v2421_v48 = vpop.permute.xlu1 %2420 }
 0x8a0   :  { %vm2408_vm15 = vcmp.eq.s32.totalorder %v2397_v56, %v2808_v61 }
 0x8a1   :  { %v2409_v62 = vsel %vm2408_vm15, %v2393_v52, 0.0 }
 0x8a2   :  { %v2410_v63 = vsel %vm2380_vm13, %v2409_v62, 0.0 }
 0x8a3   :  { %2411 = vadd.xlane.f32.xlu0 %v2410_v63 }
 0x930   :  { %v2412_v38 = vpop.xlane.xlu0 %2411 }
 0x931   :  { %v2417_v39 = vsel %vm2414_vm1, %v2412_v38, %v2416_v29 }
 0x932   :  { %v2423_v41 = vsel %vm2413_vm2, %v2421_v48, %v2417_v39 }
 0x933   :  { %2424 = vst [vmem:[%s3337_s16] sm:$0x3] %v2423_v41 }
 0x934   :  { %2433 = vsyncpa [#allocation3], 1 }

</bundles_post_ra>
